<compile_context>
chip_gen: v7x
topology: tpu7x:2x2x1
jax: 0.10.0
libtpu: 0.0.40
codegen_flags: <defaults>
</compile_context>

<pallas_src>
import functools

import jax
import jax.numpy as jnp
from jax.experimental import pallas as pl
from jax.experimental.pallas import tpu as pltpu

_VMEM_LIMIT = 32 * 1024 * 1024      # explicit scoped-VMEM limit, safe on v5e/v6e/v7x
_NEG_INF = -1e30


def _pick_i_tile(S, E, budget_bytes=4 << 20):
    """Largest i-tile (divisor of S) whose (TI, S, E) f32 score block fits the budget."""
    ti_max = max(1, budget_bytes // (S * E * 4))
    if S <= ti_max:
        return S
    best = 1
    for t in range(1, int(ti_max) + 1):
        if S % t == 0:
            best = t
    return best


# --------------------------------------------------------------------------------------
# Kernel A: intra-attention scores, tiled over the i index, max-over-i accumulator.
# --------------------------------------------------------------------------------------
def _att_scores_kernel(embed_ref, wi_ref, wj_ref, b1_ref, w2_ref, m_ref,
                       ui_ref, uj_ref, *, ti):
    S, E = ui_ref.shape
    ii = pl.program_id(1)

    # Cache Wi*e / Wj*e for this batch row once per batch block (i is the inner axis).
    @pl.when(ii == 0)
    def _():
        emb2d = embed_ref[0]                                          # (S, E) bf16
        ui_ref[...] = (jnp.dot(emb2d, wi_ref[...],
                               preferred_element_type=jnp.float32)
                       + b1_ref[...])                                 # fold b1 in once
        uj_ref[...] = jnp.dot(emb2d, wj_ref[...],
                              preferred_element_type=jnp.float32)
        m_ref[...] = jnp.full(m_ref.shape, _NEG_INF, jnp.float32)     # running-max init

    i0 = pl.multiple_of(ii * ti, ti)
    ui_blk = ui_ref[pl.ds(i0, ti), :]                                 # (TI, E) f32
    uj = uj_ref[...]                                                  # (S,  E) f32

    # Pairwise ReLU block kept in f32 (v5e VPU has no bf16 path).
    s2 = jnp.maximum(ui_blk[:, None, :] + uj[None, :, :], 0.0)        # (TI, S, E)
    # w2 contraction as multiply + lane reduce -> lane-dense (TI, S) scores.
    scores = jnp.sum(s2 * w2_ref[...], axis=-1)                       # (TI, S)

    # torch sets s3[:, i, i] = 0; equivalently exclude i == j from the max here and
    # apply max(m + b2, 0) downstream (kernel B).
    row = jax.lax.broadcasted_iota(jnp.int32, (ti, S), 0)
    col = jax.lax.broadcasted_iota(jnp.int32, (ti, S), 1)
    scores = jnp.where(col == row + i0, _NEG_INF, scores)

    part = jnp.max(scores, axis=0, keepdims=True)                     # (1, S)
    m_ref[...] = jnp.maximum(m_ref[...], part.reshape(1, 1, S))


# --------------------------------------------------------------------------------------
# Kernel B: batch softmax + attended vector v, single-layer LSTM, projection head.
# --------------------------------------------------------------------------------------
def _lstm_head_kernel(embed_ref, m_ref, wih_ref, whh_ref, bl_ref,
                      wpv_ref, wph_ref, bp_ref, wo_ref, sc_ref, out_ref,
                      *, hidden, unroll_lstm):
    B, S, E = embed_ref.shape
    H = hidden

    # ---- softmax over the batch dimension (exactly as the PyTorch code does) --------
    b2 = sc_ref[0]
    m = jnp.maximum(jnp.squeeze(m_ref[...], axis=1) + b2, 0.0)        # (B, S), diag=0 folded in
    mmax = jnp.max(m, axis=0, keepdims=True)
    expm = jnp.exp(m - mmax)
    a = expm / jnp.sum(expm, axis=0, keepdims=True)                   # exact divide

    embed = embed_ref[...]                                            # (B, S, E) bf16
    v = jnp.sum(a[:, :, None] * embed, axis=1)                        # (B, E) f32

    # ---- single-layer LSTM, batch_first, h0 = c0 = 0 ---------------------------------
    # gates packed [i | f | o | g]; input projection + fused bias hoisted out of loop
    emb2d = embed.reshape(B * S, E)
    gates_x = (jnp.dot(emb2d, wih_ref[...], preferred_element_type=jnp.float32)
               .reshape(B, S, 4 * H) + bl_ref[...])
    whh = whh_ref[...]

    def step(g_t, h, c):
        gates = g_t + jnp.dot(h, whh, preferred_element_type=jnp.float32)
        sig = jax.nn.sigmoid(gates[:, :3 * H])                        # one EUP pass: i,f,o
        g_g = jnp.tanh(gates[:, 3 * H:])                              # one EUP pass: g
        i_g, f_g, o_g = sig[:, :H], sig[:, H:2 * H], sig[:, 2 * H:3 * H]
        c = f_g * c + i_g * g_g
        h = o_g * jnp.tanh(c)
        return h, c

    h = jnp.zeros((B, H), jnp.float32)
    c = jnp.zeros((B, H), jnp.float32)
    if unroll_lstm:                       # static unroll for short sequences
        for t in range(S):
            h, c = step(gates_x[:, t, :], h, c)
    else:                                 # bounded live ranges for long sequences
        def body(t, carry):
            g_t = jax.lax.dynamic_slice_in_dim(gates_x, t, 1, axis=1)[:, 0, :]
            return step(g_t, *carry)
        h, c = jax.lax.fori_loop(0, S, body, (h, c))

    # ---- head: cat(v, h) -> proj -> relu -> out -> sigmoid (concat-free) -------------
    proj = (jnp.dot(v, wpv_ref[...], preferred_element_type=jnp.float32)
            + jnp.dot(h, wph_ref[...], preferred_element_type=jnp.float32)
            + bp_ref[...])
    proj = jnp.maximum(proj, 0.0)
    logit = jnp.dot(proj, wo_ref[...], preferred_element_type=jnp.float32) + sc_ref[1]
    out_ref[...] = jax.nn.sigmoid(logit)                              # (B, 1)


# --------------------------------------------------------------------------------------
# One-time parameter prep (layout, gate permutation, dtype casts) + forward wrapper.
# --------------------------------------------------------------------------------------
def prepare_params(params):
    """Hoisted layout prep: (in, out) weight layouts, LSTM gates permuted to [i|f|o|g],
    bf16 casts for the big-matmul operands, packed true scalars."""
    E = params["emb"].shape[1]
    H = params["W_hh"].shape[1]
    W1, Wp = params["W1"], params["Wp"]
    perm = jnp.concatenate([jnp.arange(0, 2 * H),          # i, f
                            jnp.arange(3 * H, 4 * H),      # o
                            jnp.arange(2 * H, 3 * H)])     # g
    return {
        "emb": params["emb"].astype(jnp.bfloat16),
        "wi": W1[:, :E].T.astype(jnp.bfloat16),                              # (E, E)
        "wj": W1[:, E:].T.astype(jnp.bfloat16),                              # (E, E)
        "b1": params["b1"].reshape(1, E).astype(jnp.float32),
        "w2": params["W2"].reshape(1, E).astype(jnp.float32),
        "wih": params["W_ih"][perm].T.astype(jnp.bfloat16),                  # (E, 4H)
        "whh": params["W_hh"][perm].T.astype(jnp.float32),                   # (H, 4H)
        "bl": (params["b_ih"] + params["b_hh"])[perm].reshape(1, 4 * H).astype(jnp.float32),
        "wpv": Wp[:, :E].T.astype(jnp.float32),                              # (E, H) -> v
        "wph": Wp[:, E:].T.astype(jnp.float32),                              # (H, H) -> h
        "bp": params["bp"].reshape(1, H).astype(jnp.float32),
        "wo": params["Wo"].T.astype(jnp.float32),                            # (H, 1)
        "scalars": jnp.concatenate([params["b2"].reshape(1),
                                    params["bo"].reshape(1)]).astype(jnp.float32),
    }


def miarn_forward(tweet, prep):
    # TODO(synk): the embedding-table integer gather stays in XLA glue (no clean
    # single-kernel Pallas equivalent worth writing at these sizes).
    embed = prep["emb"][tweet]                          # (B, S, E) bf16
    B, S, E = embed.shape
    H = prep["whh"].shape[0]
    TI = _pick_i_tile(S, E)
    n_i = S // TI

    const2 = lambda b, i: (0, 0)
    vmem_full = pl.BlockSpec(memory_space=pltpu.MemorySpace.VMEM)
    smem_full = pl.BlockSpec(memory_space=pltpu.MemorySpace.SMEM)

    # ---- kernel A: pairwise scores, running max over i (grid tiled) ------------------
    m_raw = pl.pallas_call(
        functools.partial(_att_scores_kernel, ti=TI),
        out_shape=jax.ShapeDtypeStruct((B, 1, S), jnp.float32),
        grid=(B, n_i),
        in_specs=[
            pl.BlockSpec((1, S, E), lambda b, i: (b, 0, 0)),   # embed row, resident over i
            pl.BlockSpec((E, E), const2),                      # Wi  (VMEM-resident weight)
            pl.BlockSpec((E, E), const2),                      # Wj
            pl.BlockSpec((1, E), const2),                      # b1
            pl.BlockSpec((1, E), const2),                      # w2 row
        ],
        out_specs=pl.BlockSpec((1, 1, S), lambda b, i: (b, 0, 0)),
        scratch_shapes=[pltpu.VMEM((S, E), jnp.float32),       # ui + b1 cache
                        pltpu.VMEM((S, E), jnp.float32)],      # uj cache
        compiler_params=pltpu.CompilerParams(
            dimension_semantics=("parallel", "arbitrary"),
            vmem_limit_bytes=_VMEM_LIMIT),
    )(embed, prep["wi"], prep["wj"], prep["b1"], prep["w2"])

    # ---- kernel B: batch softmax + v + LSTM + head ------------------------------------
    out2d = pl.pallas_call(
        functools.partial(_lstm_head_kernel, hidden=H, unroll_lstm=S <= 16),
        out_shape=jax.ShapeDtypeStruct((B, 1), jnp.float32),
        in_specs=[vmem_full] * 9 + [smem_full],
        out_specs=vmem_full,
        compiler_params=pltpu.CompilerParams(vmem_limit_bytes=_VMEM_LIMIT),
    )(embed, m_raw, prep["wih"], prep["whh"], prep["bl"],
      prep["wpv"], prep["wph"], prep["bp"], prep["wo"], prep["scalars"])

    return out2d[:, -1]                                  # out.view(B, -1)[:, -1]


# --------------------------------------------------------------------------------------
# Pure-JAX mirror of the PyTorch forward (validation only).
# --------------------------------------------------------------------------------------
def miarn_reference(tweet, params):
    embed = params["emb"][tweet].astype(jnp.float32)     # (B, S, E)
    B, S, E = embed.shape
    H = params["W_hh"].shape[1]
    idx = jnp.stack(jnp.meshgrid(jnp.arange(S), jnp.arange(S), indexing="ij"),
                    axis=-1).reshape(-1, 2)              # torch.cartesian_prod
    pairs = embed[:, idx, :].reshape(B, S * S, 2 * E)
    s1 = pairs @ params["W1"].T + params["b1"]
    s2 = jnp.maximum(s1, 0.0)
    s3 = (s2 @ params["W2"].T + params["b2"]).reshape(B, S, S)
    s3 = jnp.where(jnp.eye(S, dtype=bool)[None], 0.0, s3)
    m = jnp.max(s3, axis=1)                              # (B, S)
    a = jax.nn.softmax(m, axis=0)                        # softmax over batch dim, as in torch
    v = jnp.einsum("bse,bs->be", embed, a)
    h = jnp.zeros((B, H)); c = jnp.zeros((B, H))
    bl = params["b_ih"] + params["b_hh"]
    for t in range(S):
        g = embed[:, t, :] @ params["W_ih"].T + h @ params["W_hh"].T + bl
        i_g = jax.nn.sigmoid(g[:, :H]); f_g = jax.nn.sigmoid(g[:, H:2 * H])
        g_g = jnp.tanh(g[:, 2 * H:3 * H]); o_g = jax.nn.sigmoid(g[:, 3 * H:])
        c = f_g * c + i_g * g_g
        h = o_g * jnp.tanh(c)
    combined = jnp.concatenate([v, h], axis=1)
    proj = jnp.maximum(combined @ params["Wp"].T + params["bp"], 0.0)
    out = jax.nn.sigmoid(proj @ params["Wo"].T + params["bo"])
    return out[:, -1]


if __name__ == "__main__":
    B, S, E, H, V = 2, 8, 16, 32, 50
    key = jax.random.PRNGKey(0)
    ks = jax.random.split(key, 14)

    def rnd(k, shape, scale=0.1):
        return (scale * jax.random.normal(k, shape)).astype(jnp.float32)

    params = {
        "emb": rnd(ks[0], (V, E)),
        "W1": rnd(ks[1], (E, 2 * E)), "b1": rnd(ks[2], (E,)),
        "W2": rnd(ks[3], (1, E)), "b2": rnd(ks[4], (1,)),
        "W_ih": rnd(ks[5], (4 * H, E)), "W_hh": rnd(ks[6], (4 * H, H)),
        "b_ih": rnd(ks[7], (4 * H,)), "b_hh": rnd(ks[8], (4 * H,)),
        "Wp": rnd(ks[9], (H, E + H)), "bp": rnd(ks[10], (H,)),
        "Wo": rnd(ks[11], (1, H)), "bo": rnd(ks[12], (1,)),
    }
    tweet = jax.random.randint(ks[13], (B, S), 0, V, dtype=jnp.int32)

    prep = prepare_params(params)                        # one-time layout/dtype prep
    fwd = jax.jit(miarn_forward)
    out = jax.block_until_ready(fwd(tweet, prep))
    ref = jax.block_until_ready(miarn_reference(tweet, params))
    assert out.shape == (B,), out.shape
    assert jnp.allclose(out, ref, atol=2e-3, rtol=2e-3), (out, ref)
    print("KERNEL_OK")
</pallas_src>

<mosaic_0001>
module attributes {stable_mosaic.version = 11 : i64} {
  func.func @_att_scores_kernel(%arg0: i32, %arg1: i32, %arg2: memref<1x8x16xbf16, #tpu.memory_space<vmem>>, %arg3: memref<16x16xbf16, #tpu.memory_space<vmem>>, %arg4: memref<16x16xbf16, #tpu.memory_space<vmem>>, %arg5: memref<1x16xf32, #tpu.memory_space<vmem>>, %arg6: memref<1x16xf32, #tpu.memory_space<vmem>>, %arg7: memref<1x1x8xf32, #tpu.memory_space<vmem>>, %arg8: memref<8x16xf32, #tpu.memory_space<vmem>>, %arg9: memref<8x16xf32, #tpu.memory_space<vmem>>) attributes {dimension_semantics = [#tpu.dimension_semantics<parallel>, #tpu.dimension_semantics<arbitrary>], iteration_bounds = array<i64: 2, 1>, scalar_prefetch = 0 : i64, scratch_operands = 2 : i64, tpu.core_type = #tpu.core_type<tc>, window_params = [{transform_indices = @transform_0, window_bounds = array<i64: 1, 8, 16>}, {pipeline_mode = #tpu.pipeline_mode<synchronous>, transform_indices = @transform_1, window_bounds = array<i64: 16, 16>}, {pipeline_mode = #tpu.pipeline_mode<synchronous>, transform_indices = @transform_2, window_bounds = array<i64: 16, 16>}, {pipeline_mode = #tpu.pipeline_mode<synchronous>, transform_indices = @transform_3, window_bounds = array<i64: 1, 16>}, {pipeline_mode = #tpu.pipeline_mode<synchronous>, transform_indices = @transform_4, window_bounds = array<i64: 1, 16>}, {transform_indices = @transform_5, window_bounds = array<i64: 1, 1, 8>}]} {
    %c0_i32 = arith.constant 0 : i32
    %0 = arith.cmpi eq, %arg1, %c0_i32 : i32
    %1 = arith.extui %0 : i1 to i32
    %c0_i32_0 = arith.constant 0 : i32
    %2 = arith.cmpi ne, %1, %c0_i32_0 : i32
    scf.if %2 {
      %c0_14 = arith.constant 0 : index
      %c0_15 = arith.constant 0 : index
      %c0_16 = arith.constant 0 : index
      %33 = vector.load %arg2[%c0_14, %c0_15, %c0_16] : memref<1x8x16xbf16, #tpu.memory_space<vmem>>, vector<1x8x16xbf16>
      %34 = vector.shape_cast %33 : vector<1x8x16xbf16> to vector<8x16xbf16>
      %c0_17 = arith.constant 0 : index
      %c0_18 = arith.constant 0 : index
      %35 = vector.load %arg3[%c0_17, %c0_18] : memref<16x16xbf16, #tpu.memory_space<vmem>>, vector<16x16xbf16>
      %cst_19 = arith.constant dense<0.000000e+00> : vector<8x16xf32>
      %36 = tpu.matmul %34, %35, %cst_19 {dimension_numbers = #tpu.dot_dimension_numbers<[1], [0], [0], [1], [0, 0, 1, 1], [], []>} : vector<8x16xbf16>, vector<16x16xbf16>, vector<8x16xf32> -> vector<8x16xf32>
      %c0_20 = arith.constant 0 : index
      %c0_21 = arith.constant 0 : index
      %37 = vector.load %arg5[%c0_20, %c0_21] : memref<1x16xf32, #tpu.memory_space<vmem>>, vector<1x16xf32>
      %38 = vector.broadcast %37 : vector<1x16xf32> to vector<8x16xf32>
      %39 = arith.addf %36, %38 : vector<8x16xf32>
      %c0_22 = arith.constant 0 : index
      %c0_23 = arith.constant 0 : index
      %40 = vector.load %arg8[%c0_22, %c0_23] : memref<8x16xf32, #tpu.memory_space<vmem>>, vector<8x16xf32>
      tpu.vector_store %arg8[%c0_22, %c0_23], %39 {strides = array<i32>} : memref<8x16xf32, #tpu.memory_space<vmem>>, vector<8x16xf32>,
      %c0_24 = arith.constant 0 : index
      %c0_25 = arith.constant 0 : index
      %41 = vector.load %arg4[%c0_24, %c0_25] : memref<16x16xbf16, #tpu.memory_space<vmem>>, vector<16x16xbf16>
      %cst_26 = arith.constant dense<0.000000e+00> : vector<8x16xf32>
      %42 = tpu.matmul %34, %41, %cst_26 {dimension_numbers = #tpu.dot_dimension_numbers<[1], [0], [0], [1], [0, 0, 1, 1], [], []>} : vector<8x16xbf16>, vector<16x16xbf16>, vector<8x16xf32> -> vector<8x16xf32>
      %c0_27 = arith.constant 0 : index
      %c0_28 = arith.constant 0 : index
      %43 = vector.load %arg9[%c0_27, %c0_28] : memref<8x16xf32, #tpu.memory_space<vmem>>, vector<8x16xf32>
      tpu.vector_store %arg9[%c0_27, %c0_28], %42 {strides = array<i32>} : memref<8x16xf32, #tpu.memory_space<vmem>>, vector<8x16xf32>,
      %cst_29 = arith.constant -1.000000e+30 : f32
      %44 = vector.broadcast %cst_29 : f32 to vector<1x1x8xf32>
      %c0_30 = arith.constant 0 : index
      %c0_31 = arith.constant 0 : index
      %c0_32 = arith.constant 0 : index
      %45 = vector.load %arg7[%c0_30, %c0_31, %c0_32] : memref<1x1x8xf32, #tpu.memory_space<vmem>>, vector<1x1x8xf32>
      tpu.vector_store %arg7[%c0_30, %c0_31, %c0_32], %44 {strides = array<i32>} : memref<1x1x8xf32, #tpu.memory_space<vmem>>, vector<1x1x8xf32>,
    } else {
    }
    %c8_i32 = arith.constant 8 : i32
    %3 = arith.muli %arg1, %c8_i32 : i32
    %4 = tpu.assume_multiple %3, 8 : i32
    %5 = arith.index_cast %4 : i32 to index
    %c0 = arith.constant 0 : index
    %6 = vector.load %arg8[%5, %c0] : memref<8x16xf32, #tpu.memory_space<vmem>>, vector<8x16xf32>
    %c0_1 = arith.constant 0 : index
    %c0_2 = arith.constant 0 : index
    %7 = vector.load %arg9[%c0_1, %c0_2] : memref<8x16xf32, #tpu.memory_space<vmem>>, vector<8x16xf32>
    %8 = vector.shape_cast %6 : vector<8x16xf32> to vector<8x1x16xf32>
    %9 = vector.shape_cast %7 : vector<8x16xf32> to vector<1x8x16xf32>
    %10 = vector.broadcast %8 : vector<8x1x16xf32> to vector<8x8x16xf32>
    %11 = vector.broadcast %9 : vector<1x8x16xf32> to vector<8x8x16xf32>
    %12 = arith.addf %10, %11 : vector<8x8x16xf32>
    %cst = arith.constant 0.000000e+00 : f32
    %13 = vector.broadcast %cst : f32 to vector<8x8x16xf32>
    %14 = arith.maximumf %12, %13 : vector<8x8x16xf32>
    %c0_3 = arith.constant 0 : index
    %c0_4 = arith.constant 0 : index
    %15 = vector.load %arg6[%c0_3, %c0_4] : memref<1x16xf32, #tpu.memory_space<vmem>>, vector<1x16xf32>
    %16 = vector.shape_cast %15 : vector<1x16xf32> to vector<1x1x16xf32>
    %17 = vector.broadcast %16 : vector<1x1x16xf32> to vector<8x8x16xf32>
    %18 = arith.mulf %14, %17 : vector<8x8x16xf32>
    %cst_5 = arith.constant dense<0.000000e+00> : vector<8x8xf32>
    %19 = vector.multi_reduction <add>, %18, %cst_5 [2] : vector<8x8x16xf32> to vector<8x8xf32>
    %20 = tpu.iota {dimensions = array<i32: 0>} : vector<8x8xi32>
    %21 = tpu.iota {dimensions = array<i32: 1>} : vector<8x8xi32>
    %22 = vector.broadcast %4 : i32 to vector<8x8xi32>
    %23 = arith.addi %20, %22 : vector<8x8xi32>
    %24 = arith.cmpi eq, %21, %23 : vector<8x8xi32>
    %cst_6 = arith.constant -1.000000e+30 : f32
    %25 = vector.broadcast %cst_6 : f32 to vector<8x8xf32>
    %26 = arith.select %24, %25, %19 : vector<8x8xi1>, vector<8x8xf32>
    %cst_7 = arith.constant dense<0xFF800000> : vector<8xf32>
    %27 = vector.multi_reduction <maximumf>, %26, %cst_7 [0] : vector<8x8xf32> to vector<8xf32>
    %28 = vector.shape_cast %27 : vector<8xf32> to vector<1x8xf32>
    %c0_8 = arith.constant 0 : index
    %c0_9 = arith.constant 0 : index
    %c0_10 = arith.constant 0 : index
    %29 = vector.load %arg7[%c0_8, %c0_9, %c0_10] : memref<1x1x8xf32, #tpu.memory_space<vmem>>, vector<1x1x8xf32>
    %30 = vector.shape_cast %28 : vector<1x8xf32> to vector<1x1x8xf32>
    %31 = arith.maximumf %29, %30 : vector<1x1x8xf32>
    %c0_11 = arith.constant 0 : index
    %c0_12 = arith.constant 0 : index
    %c0_13 = arith.constant 0 : index
    %32 = vector.load %arg7[%c0_11, %c0_12, %c0_13] : memref<1x1x8xf32, #tpu.memory_space<vmem>>, vector<1x1x8xf32>
    tpu.vector_store %arg7[%c0_11, %c0_12, %c0_13], %31 {strides = array<i32>} : memref<1x1x8xf32, #tpu.memory_space<vmem>>, vector<1x1x8xf32>,
    return
  }
  func.func @transform_0(%arg0: i32, %arg1: i32) -> (i32, i32, i32) {
    %c0_i32 = arith.constant 0 : i32
    %c0_i32_0 = arith.constant 0 : i32
    %c0_i32_1 = arith.constant 0 : i32
    return %arg0, %c0_i32, %c0_i32_0 : i32, i32, i32
  }
  func.func @transform_1(%arg0: i32, %arg1: i32) -> (i32, i32) {
    %c0_i32 = arith.constant 0 : i32
    %c0_i32_0 = arith.constant 0 : i32
    %c0_i32_1 = arith.constant 0 : i32
    return %c0_i32, %c0_i32_0 : i32, i32
  }
  func.func @transform_2(%arg0: i32, %arg1: i32) -> (i32, i32) {
    %c0_i32 = arith.constant 0 : i32
    %c0_i32_0 = arith.constant 0 : i32
    %c0_i32_1 = arith.constant 0 : i32
    return %c0_i32, %c0_i32_0 : i32, i32
  }
  func.func @transform_3(%arg0: i32, %arg1: i32) -> (i32, i32) {
    %c0_i32 = arith.constant 0 : i32
    %c0_i32_0 = arith.constant 0 : i32
    %c0_i32_1 = arith.constant 0 : i32
    return %c0_i32, %c0_i32_0 : i32, i32
  }
  func.func @transform_4(%arg0: i32, %arg1: i32) -> (i32, i32) {
    %c0_i32 = arith.constant 0 : i32
    %c0_i32_0 = arith.constant 0 : i32
    %c0_i32_1 = arith.constant 0 : i32
    return %c0_i32, %c0_i32_0 : i32, i32
  }
  func.func @transform_5(%arg0: i32, %arg1: i32) -> (i32, i32, i32) {
    %c0_i32 = arith.constant 0 : i32
    %c0_i32_0 = arith.constant 0 : i32
    %c0_i32_1 = arith.constant 0 : i32
    return %arg0, %c0_i32, %c0_i32_0 : i32, i32, i32
  }
}

module attributes {stable_mosaic.version = 11 : i64} {
  func.func @_lstm_head_kernel(%arg0: memref<2x8x16xbf16, #tpu.memory_space<vmem>>, %arg1: memref<2x1x8xf32, #tpu.memory_space<vmem>>, %arg2: memref<16x128xbf16, #tpu.memory_space<vmem>>, %arg3: memref<32x128xf32, #tpu.memory_space<vmem>>, %arg4: memref<1x128xf32, #tpu.memory_space<vmem>>, %arg5: memref<16x32xf32, #tpu.memory_space<vmem>>, %arg6: memref<32x32xf32, #tpu.memory_space<vmem>>, %arg7: memref<1x32xf32, #tpu.memory_space<vmem>>, %arg8: memref<32x1xf32, #tpu.memory_space<vmem>>, %arg9: memref<2xf32, #tpu.memory_space<smem>>, %arg10: memref<2x1xf32, #tpu.memory_space<vmem>>) attributes {dimension_semantics = [], scalar_prefetch = 0 : i64, scratch_operands = 0 : i64, tpu.core_type = #tpu.core_type<tc>} {
    %c0 = arith.constant 0 : index
    %0 = memref.load %arg9[%c0] : memref<2xf32, #tpu.memory_space<smem>>
    %c0_0 = arith.constant 0 : index
    %c0_1 = arith.constant 0 : index
    %c0_2 = arith.constant 0 : index
    %1 = vector.load %arg1[%c0_0, %c0_1, %c0_2] : memref<2x1x8xf32, #tpu.memory_space<vmem>>, vector<2x1x8xf32>
    %2 = vector.shape_cast %1 : vector<2x1x8xf32> to vector<2x8xf32>
    %3 = vector.broadcast %0 : f32 to vector<2x8xf32>
    %4 = arith.addf %2, %3 : vector<2x8xf32>
    %cst = arith.constant 0.000000e+00 : f32
    %5 = vector.broadcast %cst : f32 to vector<2x8xf32>
    %6 = arith.maximumf %4, %5 : vector<2x8xf32>
    %cst_3 = arith.constant dense<0xFF800000> : vector<8xf32>
    %7 = vector.multi_reduction <maximumf>, %6, %cst_3 [0] : vector<2x8xf32> to vector<8xf32>
    %8 = vector.shape_cast %7 : vector<8xf32> to vector<1x8xf32>
    %9 = vector.broadcast %8 : vector<1x8xf32> to vector<2x8xf32>
    %10 = arith.subf %6, %9 : vector<2x8xf32>
    %11 = math.exp %10 : vector<2x8xf32>
    %cst_4 = arith.constant dense<0.000000e+00> : vector<8xf32>
    %12 = vector.multi_reduction <add>, %11, %cst_4 [0] : vector<2x8xf32> to vector<8xf32>
    %13 = vector.shape_cast %12 : vector<8xf32> to vector<1x8xf32>
    %14 = vector.broadcast %13 : vector<1x8xf32> to vector<2x8xf32>
    %15 = arith.divf %11, %14 : vector<2x8xf32>
    %c0_5 = arith.constant 0 : index
    %c0_6 = arith.constant 0 : index
    %c0_7 = arith.constant 0 : index
    %16 = vector.load %arg0[%c0_5, %c0_6, %c0_7] : memref<2x8x16xbf16, #tpu.memory_space<vmem>>, vector<2x8x16xbf16>
    %17 = vector.shape_cast %15 : vector<2x8xf32> to vector<2x8x1xf32>
    %18 = arith.extf %16 : vector<2x8x16xbf16> to vector<2x8x16xf32>
    %19 = vector.broadcast %17 : vector<2x8x1xf32> to vector<2x8x16xf32>
    %20 = arith.mulf %19, %18 : vector<2x8x16xf32>
    %cst_8 = arith.constant dense<0.000000e+00> : vector<2x16xf32>
    %21 = vector.multi_reduction <add>, %20, %cst_8 [1] : vector<2x8x16xf32> to vector<2x16xf32>
    %22 = vector.shape_cast %16 : vector<2x8x16xbf16> to vector<16x16xbf16>
    %c0_9 = arith.constant 0 : index
    %c0_10 = arith.constant 0 : index
    %23 = vector.load %arg2[%c0_9, %c0_10] : memref<16x128xbf16, #tpu.memory_space<vmem>>, vector<16x128xbf16>
    %cst_11 = arith.constant dense<0.000000e+00> : vector<16x128xf32>
    %24 = tpu.matmul %22, %23, %cst_11 {dimension_numbers = #tpu.dot_dimension_numbers<[1], [0], [0], [1], [0, 0, 1, 1], [], []>} : vector<16x16xbf16>, vector<16x128xbf16>, vector<16x128xf32> -> vector<16x128xf32>
    %25 = vector.shape_cast %24 : vector<16x128xf32> to vector<2x8x128xf32>
    %c0_12 = arith.constant 0 : index
    %c0_13 = arith.constant 0 : index
    %26 = vector.load %arg4[%c0_12, %c0_13] : memref<1x128xf32, #tpu.memory_space<vmem>>, vector<1x128xf32>
    %27 = vector.shape_cast %26 : vector<1x128xf32> to vector<1x1x128xf32>
    %28 = vector.broadcast %27 : vector<1x1x128xf32> to vector<2x8x128xf32>
    %29 = arith.addf %25, %28 : vector<2x8x128xf32>
    %c0_14 = arith.constant 0 : index
    %c0_15 = arith.constant 0 : index
    %30 = vector.load %arg3[%c0_14, %c0_15] : memref<32x128xf32, #tpu.memory_space<vmem>>, vector<32x128xf32>
    %cst_16 = arith.constant 0.000000e+00 : f32
    %31 = vector.broadcast %cst_16 : f32 to vector<2x32xf32>
    %cst_17 = arith.constant 0.000000e+00 : f32
    %32 = vector.broadcast %cst_17 : f32 to vector<2x32xf32>
    %33 = vector.extract_strided_slice %29 {offsets = [0, 0, 0], sizes = [2, 1, 128], strides = [1, 1, 1]} : vector<2x8x128xf32> to vector<2x1x128xf32>
    %34 = vector.shape_cast %33 : vector<2x1x128xf32> to vector<2x128xf32>
    %cst_18 = arith.constant dense<0.000000e+00> : vector<2x128xf32>
    %35 = tpu.matmul %31, %30, %cst_18 {dimension_numbers = #tpu.dot_dimension_numbers<[1], [0], [0], [1], [0, 0, 1, 1], [], []>} : vector<2x32xf32>, vector<32x128xf32>, vector<2x128xf32> -> vector<2x128xf32>
    %36 = arith.addf %34, %35 : vector<2x128xf32>
    %37 = vector.extract_strided_slice %36 {offsets = [0, 0], sizes = [2, 96], strides = [1, 1]} : vector<2x128xf32> to vector<2x96xf32>
    %38 = arith.negf %37 : vector<2x96xf32>
    %39 = math.exp %38 : vector<2x96xf32>
    %cst_19 = arith.constant 1.000000e+00 : f32
    %40 = vector.broadcast %cst_19 : f32 to vector<2x96xf32>
    %41 = arith.addf %40, %39 : vector<2x96xf32>
    %42 = arith.divf %40, %41 : vector<2x96xf32>
    %43 = vector.extract_strided_slice %36 {offsets = [0, 96], sizes = [2, 32], strides = [1, 1]} : vector<2x128xf32> to vector<2x32xf32>
    %44 = math.tanh %43 : vector<2x32xf32>
    %45 = vector.extract_strided_slice %42 {offsets = [0, 0], sizes = [2, 32], strides = [1, 1]} : vector<2x96xf32> to vector<2x32xf32>
    %46 = vector.extract_strided_slice %42 {offsets = [0, 32], sizes = [2, 32], strides = [1, 1]} : vector<2x96xf32> to vector<2x32xf32>
    %47 = vector.extract_strided_slice %42 {offsets = [0, 64], sizes = [2, 32], strides = [1, 1]} : vector<2x96xf32> to vector<2x32xf32>
    %48 = arith.mulf %46, %32 : vector<2x32xf32>
    %49 = arith.mulf %45, %44 : vector<2x32xf32>
    %50 = arith.addf %48, %49 : vector<2x32xf32>
    %51 = math.tanh %50 : vector<2x32xf32>
    %52 = arith.mulf %47, %51 : vector<2x32xf32>
    %53 = vector.extract_strided_slice %29 {offsets = [0, 1, 0], sizes = [2, 1, 128], strides = [1, 1, 1]} : vector<2x8x128xf32> to vector<2x1x128xf32>
    %54 = vector.shape_cast %53 : vector<2x1x128xf32> to vector<2x128xf32>
    %cst_20 = arith.constant dense<0.000000e+00> : vector<2x128xf32>
    %55 = tpu.matmul %52, %30, %cst_20 {dimension_numbers = #tpu.dot_dimension_numbers<[1], [0], [0], [1], [0, 0, 1, 1], [], []>} : vector<2x32xf32>, vector<32x128xf32>, vector<2x128xf32> -> vector<2x128xf32>
    %56 = arith.addf %54, %55 : vector<2x128xf32>
    %57 = vector.extract_strided_slice %56 {offsets = [0, 0], sizes = [2, 96], strides = [1, 1]} : vector<2x128xf32> to vector<2x96xf32>
    %58 = arith.negf %57 : vector<2x96xf32>
    %59 = math.exp %58 : vector<2x96xf32>
    %cst_21 = arith.constant 1.000000e+00 : f32
    %60 = vector.broadcast %cst_21 : f32 to vector<2x96xf32>
    %61 = arith.addf %60, %59 : vector<2x96xf32>
    %62 = arith.divf %60, %61 : vector<2x96xf32>
    %63 = vector.extract_strided_slice %56 {offsets = [0, 96], sizes = [2, 32], strides = [1, 1]} : vector<2x128xf32> to vector<2x32xf32>
    %64 = math.tanh %63 : vector<2x32xf32>
    %65 = vector.extract_strided_slice %62 {offsets = [0, 0], sizes = [2, 32], strides = [1, 1]} : vector<2x96xf32> to vector<2x32xf32>
    %66 = vector.extract_strided_slice %62 {offsets = [0, 32], sizes = [2, 32], strides = [1, 1]} : vector<2x96xf32> to vector<2x32xf32>
    %67 = vector.extract_strided_slice %62 {offsets = [0, 64], sizes = [2, 32], strides = [1, 1]} : vector<2x96xf32> to vector<2x32xf32>
    %68 = arith.mulf %66, %50 : vector<2x32xf32>
    %69 = arith.mulf %65, %64 : vector<2x32xf32>
    %70 = arith.addf %68, %69 : vector<2x32xf32>
    %71 = math.tanh %70 : vector<2x32xf32>
    %72 = arith.mulf %67, %71 : vector<2x32xf32>
    %73 = vector.extract_strided_slice %29 {offsets = [0, 2, 0], sizes = [2, 1, 128], strides = [1, 1, 1]} : vector<2x8x128xf32> to vector<2x1x128xf32>
    %74 = vector.shape_cast %73 : vector<2x1x128xf32> to vector<2x128xf32>
    %cst_22 = arith.constant dense<0.000000e+00> : vector<2x128xf32>
    %75 = tpu.matmul %72, %30, %cst_22 {dimension_numbers = #tpu.dot_dimension_numbers<[1], [0], [0], [1], [0, 0, 1, 1], [], []>} : vector<2x32xf32>, vector<32x128xf32>, vector<2x128xf32> -> vector<2x128xf32>
    %76 = arith.addf %74, %75 : vector<2x128xf32>
    %77 = vector.extract_strided_slice %76 {offsets = [0, 0], sizes = [2, 96], strides = [1, 1]} : vector<2x128xf32> to vector<2x96xf32>
    %78 = arith.negf %77 : vector<2x96xf32>
    %79 = math.exp %78 : vector<2x96xf32>
    %cst_23 = arith.constant 1.000000e+00 : f32
    %80 = vector.broadcast %cst_23 : f32 to vector<2x96xf32>
    %81 = arith.addf %80, %79 : vector<2x96xf32>
    %82 = arith.divf %80, %81 : vector<2x96xf32>
    %83 = vector.extract_strided_slice %76 {offsets = [0, 96], sizes = [2, 32], strides = [1, 1]} : vector<2x128xf32> to vector<2x32xf32>
    %84 = math.tanh %83 : vector<2x32xf32>
    %85 = vector.extract_strided_slice %82 {offsets = [0, 0], sizes = [2, 32], strides = [1, 1]} : vector<2x96xf32> to vector<2x32xf32>
    %86 = vector.extract_strided_slice %82 {offsets = [0, 32], sizes = [2, 32], strides = [1, 1]} : vector<2x96xf32> to vector<2x32xf32>
    %87 = vector.extract_strided_slice %82 {offsets = [0, 64], sizes = [2, 32], strides = [1, 1]} : vector<2x96xf32> to vector<2x32xf32>
    %88 = arith.mulf %86, %70 : vector<2x32xf32>
    %89 = arith.mulf %85, %84 : vector<2x32xf32>
    %90 = arith.addf %88, %89 : vector<2x32xf32>
    %91 = math.tanh %90 : vector<2x32xf32>
    %92 = arith.mulf %87, %91 : vector<2x32xf32>
    %93 = vector.extract_strided_slice %29 {offsets = [0, 3, 0], sizes = [2, 1, 128], strides = [1, 1, 1]} : vector<2x8x128xf32> to vector<2x1x128xf32>
    %94 = vector.shape_cast %93 : vector<2x1x128xf32> to vector<2x128xf32>
    %cst_24 = arith.constant dense<0.000000e+00> : vector<2x128xf32>
    %95 = tpu.matmul %92, %30, %cst_24 {dimension_numbers = #tpu.dot_dimension_numbers<[1], [0], [0], [1], [0, 0, 1, 1], [], []>} : vector<2x32xf32>, vector<32x128xf32>, vector<2x128xf32> -> vector<2x128xf32>
    %96 = arith.addf %94, %95 : vector<2x128xf32>
    %97 = vector.extract_strided_slice %96 {offsets = [0, 0], sizes = [2, 96], strides = [1, 1]} : vector<2x128xf32> to vector<2x96xf32>
    %98 = arith.negf %97 : vector<2x96xf32>
    %99 = math.exp %98 : vector<2x96xf32>
    %cst_25 = arith.constant 1.000000e+00 : f32
    %100 = vector.broadcast %cst_25 : f32 to vector<2x96xf32>
    %101 = arith.addf %100, %99 : vector<2x96xf32>
    %102 = arith.divf %100, %101 : vector<2x96xf32>
    %103 = vector.extract_strided_slice %96 {offsets = [0, 96], sizes = [2, 32], strides = [1, 1]} : vector<2x128xf32> to vector<2x32xf32>
    %104 = math.tanh %103 : vector<2x32xf32>
    %105 = vector.extract_strided_slice %102 {offsets = [0, 0], sizes = [2, 32], strides = [1, 1]} : vector<2x96xf32> to vector<2x32xf32>
    %106 = vector.extract_strided_slice %102 {offsets = [0, 32], sizes = [2, 32], strides = [1, 1]} : vector<2x96xf32> to vector<2x32xf32>
    %107 = vector.extract_strided_slice %102 {offsets = [0, 64], sizes = [2, 32], strides = [1, 1]} : vector<2x96xf32> to vector<2x32xf32>
    %108 = arith.mulf %106, %90 : vector<2x32xf32>
    %109 = arith.mulf %105, %104 : vector<2x32xf32>
    %110 = arith.addf %108, %109 : vector<2x32xf32>
    %111 = math.tanh %110 : vector<2x32xf32>
    %112 = arith.mulf %107, %111 : vector<2x32xf32>
    %113 = vector.extract_strided_slice %29 {offsets = [0, 4, 0], sizes = [2, 1, 128], strides = [1, 1, 1]} : vector<2x8x128xf32> to vector<2x1x128xf32>
    %114 = vector.shape_cast %113 : vector<2x1x128xf32> to vector<2x128xf32>
    %cst_26 = arith.constant dense<0.000000e+00> : vector<2x128xf32>
    %115 = tpu.matmul %112, %30, %cst_26 {dimension_numbers = #tpu.dot_dimension_numbers<[1], [0], [0], [1], [0, 0, 1, 1], [], []>} : vector<2x32xf32>, vector<32x128xf32>, vector<2x128xf32> -> vector<2x128xf32>
    %116 = arith.addf %114, %115 : vector<2x128xf32>
    %117 = vector.extract_strided_slice %116 {offsets = [0, 0], sizes = [2, 96], strides = [1, 1]} : vector<2x128xf32> to vector<2x96xf32>
    %118 = arith.negf %117 : vector<2x96xf32>
    %119 = math.exp %118 : vector<2x96xf32>
    %cst_27 = arith.constant 1.000000e+00 : f32
    %120 = vector.broadcast %cst_27 : f32 to vector<2x96xf32>
    %121 = arith.addf %120, %119 : vector<2x96xf32>
    %122 = arith.divf %120, %121 : vector<2x96xf32>
    %123 = vector.extract_strided_slice %116 {offsets = [0, 96], sizes = [2, 32], strides = [1, 1]} : vector<2x128xf32> to vector<2x32xf32>
    %124 = math.tanh %123 : vector<2x32xf32>
    %125 = vector.extract_strided_slice %122 {offsets = [0, 0], sizes = [2, 32], strides = [1, 1]} : vector<2x96xf32> to vector<2x32xf32>
    %126 = vector.extract_strided_slice %122 {offsets = [0, 32], sizes = [2, 32], strides = [1, 1]} : vector<2x96xf32> to vector<2x32xf32>
    %127 = vector.extract_strided_slice %122 {offsets = [0, 64], sizes = [2, 32], strides = [1, 1]} : vector<2x96xf32> to vector<2x32xf32>
    %128 = arith.mulf %126, %110 : vector<2x32xf32>
    %129 = arith.mulf %125, %124 : vector<2x32xf32>
    %130 = arith.addf %128, %129 : vector<2x32xf32>
    %131 = math.tanh %130 : vector<2x32xf32>
    %132 = arith.mulf %127, %131 : vector<2x32xf32>
    %133 = vector.extract_strided_slice %29 {offsets = [0, 5, 0], sizes = [2, 1, 128], strides = [1, 1, 1]} : vector<2x8x128xf32> to vector<2x1x128xf32>
    %134 = vector.shape_cast %133 : vector<2x1x128xf32> to vector<2x128xf32>
    %cst_28 = arith.constant dense<0.000000e+00> : vector<2x128xf32>
    %135 = tpu.matmul %132, %30, %cst_28 {dimension_numbers = #tpu.dot_dimension_numbers<[1], [0], [0], [1], [0, 0, 1, 1], [], []>} : vector<2x32xf32>, vector<32x128xf32>, vector<2x128xf32> -> vector<2x128xf32>
    %136 = arith.addf %134, %135 : vector<2x128xf32>
    %137 = vector.extract_strided_slice %136 {offsets = [0, 0], sizes = [2, 96], strides = [1, 1]} : vector<2x128xf32> to vector<2x96xf32>
    %138 = arith.negf %137 : vector<2x96xf32>
    %139 = math.exp %138 : vector<2x96xf32>
    %cst_29 = arith.constant 1.000000e+00 : f32
    %140 = vector.broadcast %cst_29 : f32 to vector<2x96xf32>
    %141 = arith.addf %140, %139 : vector<2x96xf32>
    %142 = arith.divf %140, %141 : vector<2x96xf32>
    %143 = vector.extract_strided_slice %136 {offsets = [0, 96], sizes = [2, 32], strides = [1, 1]} : vector<2x128xf32> to vector<2x32xf32>
    %144 = math.tanh %143 : vector<2x32xf32>
    %145 = vector.extract_strided_slice %142 {offsets = [0, 0], sizes = [2, 32], strides = [1, 1]} : vector<2x96xf32> to vector<2x32xf32>
    %146 = vector.extract_strided_slice %142 {offsets = [0, 32], sizes = [2, 32], strides = [1, 1]} : vector<2x96xf32> to vector<2x32xf32>
    %147 = vector.extract_strided_slice %142 {offsets = [0, 64], sizes = [2, 32], strides = [1, 1]} : vector<2x96xf32> to vector<2x32xf32>
    %148 = arith.mulf %146, %130 : vector<2x32xf32>
    %149 = arith.mulf %145, %144 : vector<2x32xf32>
    %150 = arith.addf %148, %149 : vector<2x32xf32>
    %151 = math.tanh %150 : vector<2x32xf32>
    %152 = arith.mulf %147, %151 : vector<2x32xf32>
    %153 = vector.extract_strided_slice %29 {offsets = [0, 6, 0], sizes = [2, 1, 128], strides = [1, 1, 1]} : vector<2x8x128xf32> to vector<2x1x128xf32>
    %154 = vector.shape_cast %153 : vector<2x1x128xf32> to vector<2x128xf32>
    %cst_30 = arith.constant dense<0.000000e+00> : vector<2x128xf32>
    %155 = tpu.matmul %152, %30, %cst_30 {dimension_numbers = #tpu.dot_dimension_numbers<[1], [0], [0], [1], [0, 0, 1, 1], [], []>} : vector<2x32xf32>, vector<32x128xf32>, vector<2x128xf32> -> vector<2x128xf32>
    %156 = arith.addf %154, %155 : vector<2x128xf32>
    %157 = vector.extract_strided_slice %156 {offsets = [0, 0], sizes = [2, 96], strides = [1, 1]} : vector<2x128xf32> to vector<2x96xf32>
    %158 = arith.negf %157 : vector<2x96xf32>
    %159 = math.exp %158 : vector<2x96xf32>
    %cst_31 = arith.constant 1.000000e+00 : f32
    %160 = vector.broadcast %cst_31 : f32 to vector<2x96xf32>
    %161 = arith.addf %160, %159 : vector<2x96xf32>
    %162 = arith.divf %160, %161 : vector<2x96xf32>
    %163 = vector.extract_strided_slice %156 {offsets = [0, 96], sizes = [2, 32], strides = [1, 1]} : vector<2x128xf32> to vector<2x32xf32>
    %164 = math.tanh %163 : vector<2x32xf32>
    %165 = vector.extract_strided_slice %162 {offsets = [0, 0], sizes = [2, 32], strides = [1, 1]} : vector<2x96xf32> to vector<2x32xf32>
    %166 = vector.extract_strided_slice %162 {offsets = [0, 32], sizes = [2, 32], strides = [1, 1]} : vector<2x96xf32> to vector<2x32xf32>
    %167 = vector.extract_strided_slice %162 {offsets = [0, 64], sizes = [2, 32], strides = [1, 1]} : vector<2x96xf32> to vector<2x32xf32>
    %168 = arith.mulf %166, %150 : vector<2x32xf32>
    %169 = arith.mulf %165, %164 : vector<2x32xf32>
    %170 = arith.addf %168, %169 : vector<2x32xf32>
    %171 = math.tanh %170 : vector<2x32xf32>
    %172 = arith.mulf %167, %171 : vector<2x32xf32>
    %173 = vector.extract_strided_slice %29 {offsets = [0, 7, 0], sizes = [2, 1, 128], strides = [1, 1, 1]} : vector<2x8x128xf32> to vector<2x1x128xf32>
    %174 = vector.shape_cast %173 : vector<2x1x128xf32> to vector<2x128xf32>
    %cst_32 = arith.constant dense<0.000000e+00> : vector<2x128xf32>
    %175 = tpu.matmul %172, %30, %cst_32 {dimension_numbers = #tpu.dot_dimension_numbers<[1], [0], [0], [1], [0, 0, 1, 1], [], []>} : vector<2x32xf32>, vector<32x128xf32>, vector<2x128xf32> -> vector<2x128xf32>
    %176 = arith.addf %174, %175 : vector<2x128xf32>
    %177 = vector.extract_strided_slice %176 {offsets = [0, 0], sizes = [2, 96], strides = [1, 1]} : vector<2x128xf32> to vector<2x96xf32>
    %178 = arith.negf %177 : vector<2x96xf32>
    %179 = math.exp %178 : vector<2x96xf32>
    %cst_33 = arith.constant 1.000000e+00 : f32
    %180 = vector.broadcast %cst_33 : f32 to vector<2x96xf32>
    %181 = arith.addf %180, %179 : vector<2x96xf32>
    %182 = arith.divf %180, %181 : vector<2x96xf32>
    %183 = vector.extract_strided_slice %176 {offsets = [0, 96], sizes = [2, 32], strides = [1, 1]} : vector<2x128xf32> to vector<2x32xf32>
    %184 = math.tanh %183 : vector<2x32xf32>
    %185 = vector.extract_strided_slice %182 {offsets = [0, 0], sizes = [2, 32], strides = [1, 1]} : vector<2x96xf32> to vector<2x32xf32>
    %186 = vector.extract_strided_slice %182 {offsets = [0, 32], sizes = [2, 32], strides = [1, 1]} : vector<2x96xf32> to vector<2x32xf32>
    %187 = vector.extract_strided_slice %182 {offsets = [0, 64], sizes = [2, 32], strides = [1, 1]} : vector<2x96xf32> to vector<2x32xf32>
    %188 = arith.mulf %186, %170 : vector<2x32xf32>
    %189 = arith.mulf %185, %184 : vector<2x32xf32>
    %190 = arith.addf %188, %189 : vector<2x32xf32>
    %191 = math.tanh %190 : vector<2x32xf32>
    %192 = arith.mulf %187, %191 : vector<2x32xf32>
    %c0_34 = arith.constant 0 : index
    %c0_35 = arith.constant 0 : index
    %193 = vector.load %arg5[%c0_34, %c0_35] : memref<16x32xf32, #tpu.memory_space<vmem>>, vector<16x32xf32>
    %cst_36 = arith.constant dense<0.000000e+00> : vector<2x32xf32>
    %194 = tpu.matmul %21, %193, %cst_36 {dimension_numbers = #tpu.dot_dimension_numbers<[1], [0], [0], [1], [0, 0, 1, 1], [], []>} : vector<2x16xf32>, vector<16x32xf32>, vector<2x32xf32> -> vector<2x32xf32>
    %c0_37 = arith.constant 0 : index
    %c0_38 = arith.constant 0 : index
    %195 = vector.load %arg6[%c0_37, %c0_38] : memref<32x32xf32, #tpu.memory_space<vmem>>, vector<32x32xf32>
    %cst_39 = arith.constant dense<0.000000e+00> : vector<2x32xf32>
    %196 = tpu.matmul %192, %195, %cst_39 {dimension_numbers = #tpu.dot_dimension_numbers<[1], [0], [0], [1], [0, 0, 1, 1], [], []>} : vector<2x32xf32>, vector<32x32xf32>, vector<2x32xf32> -> vector<2x32xf32>
    %197 = arith.addf %194, %196 : vector<2x32xf32>
    %c0_40 = arith.constant 0 : index
    %c0_41 = arith.constant 0 : index
    %198 = vector.load %arg7[%c0_40, %c0_41] : memref<1x32xf32, #tpu.memory_space<vmem>>, vector<1x32xf32>
    %199 = vector.broadcast %198 : vector<1x32xf32> to vector<2x32xf32>
    %200 = arith.addf %197, %199 : vector<2x32xf32>
    %cst_42 = arith.constant 0.000000e+00 : f32
    %201 = vector.broadcast %cst_42 : f32 to vector<2x32xf32>
    %202 = arith.maximumf %200, %201 : vector<2x32xf32>
    %c0_43 = arith.constant 0 : index
    %c0_44 = arith.constant 0 : index
    %203 = vector.load %arg8[%c0_43, %c0_44] : memref<32x1xf32, #tpu.memory_space<vmem>>, vector<32x1xf32>
    %cst_45 = arith.constant dense<0.000000e+00> : vector<2x1xf32>
    %204 = tpu.matmul %202, %203, %cst_45 {dimension_numbers = #tpu.dot_dimension_numbers<[1], [0], [0], [1], [0, 0, 1, 1], [], []>} : vector<2x32xf32>, vector<32x1xf32>, vector<2x1xf32> -> vector<2x1xf32>
    %c1 = arith.constant 1 : index
    %205 = memref.load %arg9[%c1] : memref<2xf32, #tpu.memory_space<smem>>
    %206 = vector.broadcast %205 : f32 to vector<2x1xf32>
    %207 = arith.addf %204, %206 : vector<2x1xf32>
    %208 = arith.negf %207 : vector<2x1xf32>
    %209 = math.exp %208 : vector<2x1xf32>
    %cst_46 = arith.constant 1.000000e+00 : f32
    %210 = vector.broadcast %cst_46 : f32 to vector<2x1xf32>
    %211 = arith.addf %210, %209 : vector<2x1xf32>
    %212 = arith.divf %210, %211 : vector<2x1xf32>
    %c0_47 = arith.constant 0 : index
    %c0_48 = arith.constant 0 : index
    %213 = vector.load %arg10[%c0_47, %c0_48] : memref<2x1xf32, #tpu.memory_space<vmem>>, vector<2x1xf32>
    tpu.vector_store %arg10[%c0_47, %c0_48], %212 {strides = array<i32>} : memref<2x1xf32, #tpu.memory_space<vmem>>, vector<2x1xf32>,
    return
  }
}

</mosaic_0001>

<bundles_post_ra>
// kernel: miarn_forward.2
= control target key start
LH: loop header
LB: loop body
LE: loop exit
PB: predicated region body
PF: predicated region fallthrough
CT: control target
= control target key end

     0   :  { %s748_s18 = smov 0   ;;  %s750_s19 = smov 0   ;;  %s820_s0 = inlined_call_operand.vmem [shape: bf16[2,8,16], index: 0, kind: input, shape index: {}]   ;;  %s821_s1 = inlined_call_operand.vmem [shape: bf16[16,16], index: 1, kind: input, shape index: {}]   ;;  %s822_s2 = inlined_call_operand.vmem [shape: bf16[16,16], index: 2, kind: input, shape index: {}]   ;;  %s823_s3 = inlined_call_operand.vmem [shape: f32[1,16], index: 3, kind: input, shape index: {}]   ;;  %s824_s4 = inlined_call_operand.vmem [shape: f32[1,16], index: 4, kind: input, shape index: {}]   ;;  %s825_s5 = inlined_call_operand.vmem [shape: f32[2,1,8], index: 5, kind: output, shape index: {}]  }
   0x1   :  { %s752_s20 = smov 0  }
   0x2 LB: > { %s27_s21 = sadd.s32 1, %s708_s19  ;;  %p633_p0 = scmp.ge.s32.totalorder %s712_s20, 1  ;;  %s712_s20 = sphi %s752_s20, %s15_s20   ;;  %s708_s19 = sphi %s750_s19, %s827_s19   ;;  %s704_s18 = sphi %s748_s18, %s826_s18  }
   0x3   : > { %p29_p1 = scmp.ge.s32.totalorder %s27_s21, 2  ;;  %p198_p2 = scmp.lt.s32.totalorder %s712_s20, 3 }
   0x5   : > { %s829_s21 = smov (%p29_p1, %s27_s21), 0  ;;  %p199_p3 = pnand %p633_p0, %p198_p2 }
   0x6   : > { %v687_v0 = vld [vmem:[%s821_s1] sm:$0xff] (!%p199_p3)   ;;  %v714_v1 = vmov (!%p199_p3), 0.0   ;;  %p223_p4 = scmp.lt.s32.totalorder (!%p199_p3), %s704_s18, 1  ;;  %vm715_vm0 = vmmov (!%p199_p3), 0   ;;  %vm345_vm1 = vcmask (!%p199_p3), 57344   ;;  %vm251_vm2 = vcmask (!%p199_p3), 130048  }
   0x7   : > { %202 = sbr.rel (%p199_p3) target bundleno = 429 (0x1ad), region = 40  ;;  %647 = vmatprep.subr.bf16.mxu0 (!%p199_p3), %v714_v1  ;;  %653 = vmatprep.subr.bf16.mxu1 (!%p199_p3), %v714_v1  ;;  %v688_v2 = vld [vmem:[%s822_s2] sm:$0xff] (!%p199_p3)   ;;  %v716_v3 = vmov (!%p199_p3), -1e+30   ;;  %v717_v6 = vmov (!%p199_p3), 1966171168   ;;  %v356_v8 = vlaneseq (!%p199_p3) }
   0x8   : > { %648 = vmatpush3.bf16.msra.mxu0 (!%p199_p3), %v687_v0  ;;  %649 = vmatprep.mubr.msk.bf16.mxu0 (!%p199_p3), %vm715_vm0, %v714_v1  ;;  %v635_v5 = vld [vmem:[%s823_s3] ss:$0 sm:$0xff] (!%p199_p3)  ;;  %v354_v7 = vunpack.c.l.s4 (!%p199_p3), %v717_v6  ;;  %vm544_vm3 = vcmask (!%p199_p3), 1041409   ;;  %vm546_vm4 = vcmask (!%p199_p3), 1042434   ;;  %vm548_vm5 = vcmask (!%p199_p3), 1043459  }
   0x9   : > { %655 = vmatprep.mubr.msk.bf16.mxu1 (!%p199_p3), %vm715_vm0, %v714_v1  ;;  %654 = vmatpush3.bf16.msra.mxu1 (!%p199_p3), %v688_v2  ;;  %v790_v19 = vshrl.u32 (!%p199_p3), %v356_v8, 7  ;;  %v640_v38 = vld [vmem:[%s824_s4] ss:$0 sm:$0xff] (!%p199_p3)  ;;  %vm550_vm6 = vcmask (!%p199_p3), 1044484   ;;  %vm552_vm7 = vcmask (!%p199_p3), 1045509   ;;  %vm554_vm8 = vcmask (!%p199_p3), 1046534  }
   0xa   : > { %v355_v18 = vunpack.c.0.s8 (!%p199_p3), %v354_v7  ;;  %vm556_vm9 = vcmask (!%p199_p3), 1047559   ;;  %vm560_vm11 = vcmask (!%p199_p3), 64512  }
   0xb   : > { %v403_v23 = vsub.s32 (!%p199_p3), 0, %v790_v19 }
   0xc   : > { %v358_v20 = vsub.s32 (!%p199_p3), %v355_v18, %v790_v19 }
   0xe   : > { %s831_s18 = smov (!%p223_p4, %s704_s18), 1 }
   0xf   : > { %s634_s26 = sshll.u32 %s831_s18, 2  ;;  %s775_s29 = scalar_lea.vmem %s825_s5, %s831_s18 }
  0x10   : > { %s226_s7 = scalar_lea.vmem %s820_s0, %s634_s26  ;;  %346 = vst.msk [vmem:[%s775_s29] sm:$0x1] %vm345_vm1, %v716_v3 }
  0x11   : > { %v235_v4 = vld [vmem:[%s226_s7] sm:$0xf] }
  0x12   : > { %650 = vmatmul.mubr.msk.bf16.vlgmr.msra.gmra.mrb[0].mxu0 %vm251_vm2, %v235_v4  ;;  %656 = vmatmul.mubr.msk.bf16.vlgmr.msra.gmra.mrb[0].mxu1 %vm251_vm2, %v235_v4 }
  0xe5   : > { %v289_v9 = vpop.f32.mrb[0].mxu0  ;;  %v338_v10 = vpop.f32.mrb[0].mxu1 }
  0xe6   : > { %v290_v11 = vadd.f32 %v635_v5, %v289_v9  ;;  %v651_v12 = vpop.f32.mrb[1].mxu0  ;;  %344 = vst.msk [vmem:[#allocation3] sm:$0xff] %vm251_vm2, %v338_v10  ;;  %v657_v13 = vpop.f32.mrb[1].mxu1 }
  0xe7   : > { %v292_v14 = vpop.f32.mrb[2].mxu0  ;;  %v341_v15 = vpop.f32.mrb[2].mxu1 }
  0xe8   : > { %295 = vst.msk [vmem:[#allocation2] sm:$0xff] %vm251_vm2, %v290_v11  ;;  %v652_v16 = vpop.f32.mrb[3].mxu0  ;;  %v658_v17 = vpop.f32.mrb[3].mxu1  ;;  %v500_v15 = vand.u32 127, %v356_v8 }
  0xea   : > { %v514_v17 = vsub.s32 %v500_v15, %v790_v19  ;;  %vm503_vm10 = vcmp.eq.s32.totalorder %v500_v15, %v790_v19 }
  0xed   : > { %v350_v28 = vld [vmem:[#allocation3] sm:$0xff] }
  0xef   : > { %v349_v21 = vld [vmem:[#allocation2] sm:$0xff] }
  0xf0   : > { %v359_v22 = vrot.slane %v349_v21, %v358_v20  ;;  %v352_v24 = vcombine.high %v349_v21, %v349_v21 }
  0xf2   : > { %v375_v25 = vrot.slane %v359_v22, %v358_v20  ;;  %v367_v26 = vcombine.high %v359_v22, %v359_v22  ;;  %v366_v27 = vrot.slane %v352_v24, %v358_v20 }
  0xf4   : > { %v404_v29 = vrot.slane %v375_v25, %v403_v23  ;;  %v397_v30 = vcombine.high %v375_v25, %v375_v25  ;;  %v389_v31 = vrot.slane %v367_v26, %v358_v20  ;;  %v382_v32 = vrot.slane %v366_v27, %v358_v20 }
  0xf5   : > { %v368_v33 = vcombine.high %v366_v27, %v366_v27 }
  0xf6   : > { %v441_v34 = vadd.f32 %v404_v29, %v350_v28  ;;  %v412_v35 = vrot.slane %v397_v30, %v403_v23  ;;  %v408_v36 = vrot.slane %v389_v31, %v403_v23  ;;  %v399_v37 = vcombine.high %v389_v31, %v389_v31 }
  0xf7   : > { %v420_v39 = vrot.slane %v382_v32, %v403_v23  ;;  %v396_v40 = vrot.slane %v368_v33, %v358_v20  ;;  %v398_v41 = vcombine.high %v382_v32, %v382_v32 }
  0xf8   : > { %v449_v42 = vmax.f32 %v441_v34, 0.0  ;;  %v443_v43 = vadd.f32 %v412_v35, %v350_v28  ;;  %v442_v44 = vadd.f32 %v408_v36, %v350_v28  ;;  %v416_v45 = vrot.slane %v399_v37, %v403_v23 }
  0xf9   : > { %v445_v46 = vadd.f32 %v420_v39, %v350_v28  ;;  %v424_v47 = vrot.slane %v396_v40, %v403_v23  ;;  %v428_v48 = vrot.slane %v398_v41, %v403_v23  ;;  %v400_v49 = vcombine.high %v396_v40, %v396_v40 }
  0xfa   : > { %v464_v50 = vmul.f32 %v640_v38, %v449_v42  ;;  %v451_v51 = vmax.f32 %v443_v43, 0.0  ;;  %v450_v52 = vmax.f32 %v442_v44, 0.0  ;;  %v444_v53 = vadd.f32 %v416_v45, %v350_v28 }
  0xfb   : > { %v453_v54 = vmax.f32 %v445_v46, 0.0  ;;  %v446_v55 = vadd.f32 %v424_v47, %v350_v28  ;;  %v447_v56 = vadd.f32 %v428_v48, %v350_v28  ;;  %v432_v57 = vrot.slane %v400_v49, %v403_v23  ;;  %v568_v47 = vld [vmem:[%s775_s29] sm:$0x1] }
  0xfc   : > { %v473_v58 = vsel %vm251_vm2, %v464_v50, 0.0  ;;  %v466_v59 = vmul.f32 %v640_v38, %v451_v51  ;;  %v465_v60 = vmul.f32 %v640_v38, %v450_v52  ;;  %v452_v61 = vmax.f32 %v444_v53, 0.0 }
  0xfd   : > { %474 = vadd.xlane.f32.xlu0 %v473_v58  ;;  %v454_v0 = vmax.f32 %v446_v55, 0.0  ;;  %v448_v1 = vadd.f32 %v432_v57, %v350_v28  ;;  %v468_v3 = vmul.f32 %v640_v38, %v453_v54  ;;  %v455_v4 = vmax.f32 %v447_v56, 0.0 }
  0xfe   : > { %v479_v62 = vsel %vm251_vm2, %v466_v59, 0.0  ;;  %v467_v63 = vmul.f32 %v640_v38, %v452_v61  ;;  %v476_v2 = vsel %vm251_vm2, %v465_v60, 0.0 }
  0xff   : > { %480 = vadd.xlane.f32.xlu1 %v479_v62  ;;  %v469_v6 = vmul.f32 %v640_v38, %v454_v0  ;;  %v456_v7 = vmax.f32 %v448_v1, 0.0  ;;  %v485_v9 = vsel %vm251_vm2, %v468_v3, 0.0  ;;  %v470_v10 = vmul.f32 %v640_v38, %v455_v4 }
 0x100   : > { %v482_v5 = vsel %vm251_vm2, %v467_v63, 0.0 }
 0x101   : > { %477 = vadd.xlane.f32.xlu0 %v476_v2  ;;  %v488_v11 = vsel %vm251_vm2, %v469_v6, 0.0  ;;  %v471_v12 = vmul.f32 %v640_v38, %v456_v7  ;;  %v491_v13 = vsel %vm251_vm2, %v470_v10, 0.0 }
 0x103   : > { %483 = vadd.xlane.f32.xlu1 %v482_v5  ;;  %v494_v14 = vsel %vm251_vm2, %v471_v12, 0.0 }
 0x105   : > { %486 = vadd.xlane.f32.xlu0 %v485_v9 }
 0x107   : > { %489 = vadd.xlane.f32.xlu1 %v488_v11 }
 0x109   : > { %492 = vadd.xlane.f32.xlu0 %v491_v13 }
 0x10b   : > { %495 = vadd.xlane.f32.xlu1 %v494_v14 }
 0x18a   : > { %v475_v16 = vpop.xlane.xlu0 %474 }
 0x18b   : > { %v515_v21 = vrot.slane %v475_v16, %v514_v17 }
 0x18c   : > { %v481_v18 = vpop.xlane.xlu1 %480 }
 0x18d   : > { %v523_v23 = vrot.slane %v481_v18, %v514_v17 }
 0x18e   : > { %v478_v20 = vpop.xlane.xlu0 %477 }
 0x18f   : > { %v519_v22 = vrot.slane %v478_v20, %v514_v17 }
 0x190   : > { %v484_v24 = vpop.xlane.xlu1 %483 }
 0x191   : > { %v545_v25 = vsel %vm544_vm3, %v519_v22, %v515_v21  ;;  %v527_v26 = vrot.slane %v484_v24, %v514_v17 }
 0x192   : > { %v547_v27 = vsel %vm546_vm4, %v523_v23, %v545_v25  ;;  %v487_v28 = vpop.xlane.xlu0 %486 }
 0x193   : > { %v549_v29 = vsel %vm548_vm5, %v527_v26, %v547_v27  ;;  %v531_v30 = vrot.slane %v487_v28, %v514_v17 }
 0x194   : > { %v490_v8 = vpop.xlane.xlu1 %489 }
 0x195   : > { %v551_v31 = vsel %vm550_vm6, %v531_v30, %v549_v29  ;;  %v535_v32 = vrot.slane %v490_v8, %v514_v17 }
 0x196   : > { %v493_v33 = vpop.xlane.xlu0 %492 }
 0x197   : > { %v553_v34 = vsel %vm552_vm7, %v535_v32, %v551_v31  ;;  %v539_v35 = vrot.slane %v493_v33, %v514_v17 }
 0x198   : > { %v496_v36 = vpop.xlane.xlu1 %495 }
 0x199   : > { %v555_v37 = vsel %vm554_vm8, %v539_v35, %v553_v34  ;;  %v543_v38 = vrot.slane %v496_v36, %v514_v17 }
 0x19b   : > { %v557_v39 = vsel %vm556_vm9, %v543_v38, %v555_v37 }
 0x19c   : > { %v559_v40 = vsel %vm503_vm10, -1e+30, %v557_v39 }
 0x19d   : > { %v561_v41 = vsel %vm560_vm11, %v559_v40, -inf }
 0x19e   : > { %v562_v42 = vrot.slane %v561_v41, 4 }
 0x1a0   : > { %v563_v43 = vmax.f32 %v561_v41, %v562_v42 }
 0x1a2   : > { %v564_v44 = vrot.slane %v563_v43, 2 }
 0x1a4   : > { %v565_v45 = vmax.f32 %v563_v43, %v564_v44 }
 0x1a6   : > { %v566_v46 = vrot.slane %v565_v45, 1 }
 0x1a8   : > { %v567_v48 = vmax.f32 %v565_v45, %v566_v46 }
 0x1aa   : > { %v569_v49 = vmax.f32 %v568_v47, %v567_v48 }
 0x1ac   : > { %571 = vst.msk [vmem:[%s775_s29] sm:$0x1] %vm345_vm1, %v569_v49 }
 0x1ad PF: > { %s15_s20 = sadd.s32 1, %s712_s20   ;;  %s826_s18 = smov %s708_s19 }
 0x1ae   : > { %p12_p5 = scmp.ge.s32.totalorder %s15_s20, 4   ;;  %s827_s19 = smov %s829_s21 }
 0x1b0   :  { %14 = sbr.rel (!%p12_p5) target bundleno = 2 (0x2), region = 75 }

// kernel: miarn_forward.3
= control target key start
LH: loop header
LB: loop body
LE: loop exit
PB: predicated region body
PF: predicated region fallthrough
CT: control target
= control target key end

     0   :  { %15 = vsyncpa [#allocation3], 0  ;;  %s2383_s0 = inlined_call_operand.vmem [shape: bf16[2,8,16], index: 0, kind: input, shape index: {}]   ;;  %s2384_s1 = inlined_call_operand.vmem [shape: f32[2,1,8], index: 1, kind: input, shape index: {}]   ;;  %s2385_s2 = inlined_call_operand.vmem [shape: bf16[16,128], index: 2, kind: input, shape index: {}]   ;;  %s2386_s3 = inlined_call_operand.vmem [shape: f32[32,128], index: 3, kind: input, shape index: {}]   ;;  %s2387_s4 = inlined_call_operand.vmem [shape: f32[1,128], index: 4, kind: input, shape index: {}]   ;;  %s2388_s5 = inlined_call_operand.vmem [shape: f32[16,32], index: 5, kind: input, shape index: {}]   ;;  %s2389_s6 = inlined_call_operand.vmem [shape: f32[32,32], index: 6, kind: input, shape index: {}]   ;;  %s2390_s7 = inlined_call_operand.vmem [shape: f32[1,32], index: 7, kind: input, shape index: {}]   ;;  %s2391_s8 = inlined_call_operand.vmem [shape: f32[32,1], index: 8, kind: input, shape index: {}]   ;;  %s2392_s9 = inlined_call_operand.vmem [shape: f32[2], index: 9, kind: input, shape index: {}]   ;;  %s2393_s10 = inlined_call_operand.vmem [shape: f32[2,1], index: 10, kind: output, shape index: {}]  }
   0x1   :  { %s40_s15 = sshll.u32 %s2392_s9, 4  ;;  %s41_s15 = int_to_ptr.vmem [resolvable:$true] %s40_s15 }
   0x2   :  { %s2055_s16 = scalar_lea.vmem %s41_s15, 16  ;;  %p2060_p1 = scmp.lt.s32.totalorder %s41_s15, %s41_s15 }
   0x3   :  { %p2056_p0 = scmp.ne.s32.totalorder %s41_s15, %s2055_s16  ;;  %p2061_p2 = scmp.lt.s32.totalorder %s2055_s16, %s2055_s16 }
   0x5   :  { %p2062_p3 = por %p2061_p2, %p2060_p1 }
   0x7   :  { %p2063_p4 = pnand %p2062_p3, %p2056_p0 }
   0x9   :  { %2066 = shalt.err (!%p2063_p4)
}
   0xa   :  { %s2069_s17 = smov [#allocation2]  }
   0xb   :  { %43 = dma.vmem_to_smem %s41_s15, 16, %s2069_s17, [#allocation3]  }
   0xc   :  { %2067 = dma.done.wait [#allocation3], 16  }
   0xd   :  { %2068 = vsyncadd [#allocation3], 4294967280 }
   0xe   :  { %47 = sfence }
   0xf   :  { %v1911_v0 = vld [vmem:[%s2385_s2] sm:$0xff]   ;;  %v2070_v1 = vmov 0.0   ;;  %v260_v4 = vld [vmem:[%s2386_s3 + $0x8] sm:$0xff]  ;;  %vm2071_vm0 = vmmov 0   ;;  %vm178_vm1 = vcmask 130048   ;;  %v2072_v6 = vmov 0.0|0.0  }
  0x10   :  { %1718 = vmatprep.subr.bf16.mxu1 %v2070_v1  ;;  %v158_v2 = vld [vmem:[%s2383_s0] sm:$0xff]   ;;  %1720 = vmatprep.mubr.msk.bf16.mxu1 %vm2071_vm0, %v2070_v1  ;;  %v261_v7 = vld [vmem:[%s2386_s3 + $0x10] sm:$0xff]  ;;  %v262_v8 = vld [vmem:[%s2386_s3 + $0x18] sm:$0xff]  ;;  %s2073_s29 = smov 32   ;;  %vm394_vm2 = vcmask 1041409   ;;  %vm263_vm3 = vcmask 261120  }
  0x11   :  { %v259_v3 = vld [vmem:[%s2386_s3] sm:$0xff]  ;;  %1719 = vmatpush3.bf16.msra.mxu1 %v1911_v0  ;;  %1847 = vmatprep.subr.bf16.mxu0 %v2072_v6  ;;  %v2165_v9 = vpack.c.bf16 %v262_v8, %v261_v7  ;;  %s49_s30 = sld [smem:[#allocation2]]  ;;  %vm117_vm5 = vcmask 58368   ;;  %s1660_s11 = sld [smem:[#allocation2 + $0x1]]  ;;  %vm1623_vm6 = vcmask 1024  }
  0x12   :  { %v2149_v5 = vpack.c.bf16 %v260_v4, %v259_v3  ;;  %1841 = vmatprep.subr.bf16.mxu1 %v2072_v6  ;;  %1743 = vmatprep.mubr.msk.f32.mxu0 %vm2071_vm0, %v2070_v1  ;;  %v1633_v14 = vld [vmem:[%s2387_s4] ss:$0 sm:$0xff]  ;;  %s2074_s4 = smov 64  }
  0x14   :  { %1849 = vmatpush3.bf16.msra.mxu0 %v2149_v5  ;;  %1721 = vmatmul.mubr.msk.bf16.vlgmr.msra.gmra.mrb[0].mxu1 %vm178_vm1, %v158_v2 }
  0x15   :  { %1850 = vmatprep.subr.bf16.mxu0 %v2072_v6  ;;  %1843 = vmatpush3.bf16.msra.mxu1 %v2149_v5 }
  0x16   :  { %1732 = vmatprep.mubr.msk.f32.mxu1 %vm2071_vm0, %v2070_v1  ;;  %1844 = vmatprep.subr.bf16.mxu1 %v2072_v6 }
  0x18   :  { %1852 = vmatpush3.bf16.msra.mxu0 %v2165_v9 }
  0x19   :  { %1859 = vmatprep.subr.bf16.mxu0 %v2072_v6  ;;  %1846 = vmatpush3.bf16.msra.mxu1 %v2165_v9 }
  0x1a   :  { %1853 = vmatprep.subr.bf16.mxu1 %v2072_v6 }
  0x1c   :  { %1733 = vmatmul.mubr.f32.vlgmr.msra.gmra.mrb[4].mxu1 %v2070_v1 }
  0x1d   :  { %1855 = vmatpush3.bf16.msra.mxu1 %v2149_v5  ;;  %1754 = vmatprep.mubr.msk.f32.mxu1 %vm2071_vm0, %v2070_v1 }
  0x1e   :  { %1856 = vmatprep.subr.bf16.mxu1 %v2072_v6 }
  0x21   :  { %1858 = vmatpush3.bf16.msra.mxu1 %v2165_v9 }
  0x22   :  { %1865 = vmatprep.subr.bf16.mxu1 %v2072_v6 }
  0xe7   :  { %v243_v10 = vpop.f32.mrb[0].mxu1 }
  0xe8   :  { %v1722_v11 = vpop.f32.mrb[1].mxu1  ;;  %v2187_v20 = vadd.f32 %v1633_v14, %v243_v10 }
  0xe9   :  { %v246_v12 = vpop.f32.mrb[2].mxu1 }
  0xea   :  { %v1723_v13 = vpop.f32.mrb[3].mxu1  ;;  %v2184_v16 = vadd.f32 %v1633_v14, %v246_v12 }
  0xef   :  { %v333_v15 = vpop.f32.mrb[4].mxu1 }
  0xf0   :  { %v338_v17 = vrot.slane %v333_v15, 1  ;;  %v1734_v18 = vpop.f32.mrb[5].mxu1  ;;  %v341_v21 = vadd.f32 %v333_v15, %v2187_v20 }
  0xf2   :  { %v342_v19 = vadd.f32 %v338_v17, %v2184_v16  ;;  %v1634_v25 = vmul.f32 -1.442695, %v341_v21 }
  0xf4   :  { %1914 = vtanh.f32 %v342_v19  ;;  %v1635_v24 = vmul.f32 -1.442695, %v342_v19 }
  0xf5   :  { %1916 = vtanh.f32 %v341_v21 }
  0xf6   :  { %1918 = vpow2.f32 %v1635_v24 }
  0xf7   :  { %1920 = vpow2.f32 %v1634_v25 }
  0xfe   :  { %v1915_v22 = vpop.eup %1914 }
  0xff   :  { %363 = vrot.lane.b32.xlu0 %v1915_v22, %s2073_s29  ;;  %v1917_v23 = vpop.eup %1916 }
 0x100   :  { %v1919_v26 = vpop.eup %1918 }
 0x101   :  { %v350_v27 = vadd.f32 1.0, %v1919_v26  ;;  %v1921_v28 = vpop.eup %1920 }
 0x102   :  { %v349_v29 = vadd.f32 1.0, %v1921_v28 }
 0x103   :  { %361 = vrot.lane.b32.xlu0 %v1917_v23, %s2073_s29  ;;  %1922 = vrcp.f32 %v350_v27 }
 0x104   :  { %1924 = vrcp.f32 %v349_v29 }
 0x10d   :  { %v1923_v30 = vpop.eup %1922 }
 0x10e   :  { %v1925_v33 = vpop.eup %1924  ;;  %v358_v36 = vmul.f32 0.0, %v1923_v30 }
 0x10f   :  { %v357_v39 = vmul.f32 0.0, %v1925_v33 }
 0x171   :  { %v364_v31 = vpop.permute.xlu0 %363 }
 0x172   :  { %v368_v32 = vmul.f32 %v1923_v30, %v364_v31 }
 0x174   :  { %373 = vrot.lane.b32.xlu1 %v368_v32, %s2073_s29 }
 0x175   :  { %v362_v34 = vpop.permute.xlu0 %361 }
 0x176   :  { %v367_v35 = vmul.f32 %v1925_v33, %v362_v34 }
 0x178   :  { %371 = vrot.lane.b32.xlu1 %v367_v35, %s2073_s29 }
 0x1e6   :  { %v374_v37 = vpop.permute.xlu1 %373 }
 0x1e7   :  { %v378_v38 = vadd.f32 %v374_v37, %v358_v36 }
 0x1e9   :  { %1926 = vtanh.f32 %v378_v38  ;;  %v493_v10 = vrot.slane %v378_v38, 7 }
 0x1ea   :  { %v372_v40 = vpop.permute.xlu1 %371 }
 0x1eb   :  { %v377_v41 = vadd.f32 %v372_v40, %v357_v39 }
 0x1ed   :  { %1928 = vtanh.f32 %v377_v41  ;;  %v492_v12 = vrot.slane %v377_v41, 7 }
 0x1f3   :  { %v1927_v42 = vpop.eup %1926 }
 0x1f4   :  { %385 = vrot.lane.b32.xlu0 %v1927_v42, %s2073_s29 }
 0x1f7   :  { %v1929_v43 = vpop.eup %1928 }
 0x1f8   :  { %383 = vrot.lane.b32.xlu1 %v1929_v43, %s2073_s29 }
 0x266   :  { %v386_v44 = vpop.permute.xlu0 %385 }
 0x267   :  { %v390_v45 = vmul.f32 %v1923_v30, %v386_v44 }
 0x269   :  { %v393_v47 = vrot.slane %v390_v45, 7 }
 0x26a   :  { %v384_v46 = vpop.permute.xlu1 %383 }
 0x26b   :  { %v389_v48 = vmul.f32 %v1925_v33, %v384_v46 }
 0x26d   :  { %v395_v49 = vsel %vm394_vm2, %v393_v47, %v389_v48 }
 0x26e   :  { %396 = vrot.lane.b32.xlu0 %v395_v49, %s2074_s4 }
 0x2e0   :  { %v397_v50 = vpop.permute.xlu0 %396 }
 0x2e1   :  { %1744 = vmatmul.mubr.msk.f32.vlgmr.msra.gmra.mrb[0].mxu0 %vm263_vm3, %v397_v50 }
 0x2e2   :  { %1861 = vmatpush3.bf16.msra.mxu0 %v2149_v5  ;;  %1765 = vmatprep.mubr.msk.f32.mxu0 %vm2071_vm0, %v2070_v1 }
 0x2e3   :  { %1862 = vmatprep.subr.bf16.mxu0 %v2072_v6 }
 0x2e6   :  { %1864 = vmatpush3.bf16.msra.mxu0 %v2165_v9 }
 0x2e7   :  { %1871 = vmatprep.subr.bf16.mxu0 %v2072_v6 }
 0x3b4   :  { %v466_v51 = vpop.f32.mrb[0].mxu0 }
 0x3b5   :  { %v471_v52 = vrot.slane %v466_v51, 7  ;;  %v475_v53 = vadd.f32 %v466_v51, %v2184_v16  ;;  %v1745_v54 = vpop.f32.mrb[1].mxu0 }
 0x3b7   :  { %v474_v55 = vadd.f32 %v471_v52, %v2187_v20  ;;  %1930 = vtanh.f32 %v475_v53  ;;  %v1638_v58 = vmul.f32 -1.442695, %v475_v53 }
 0x3b9   :  { %1932 = vtanh.f32 %v474_v55  ;;  %v1637_v59 = vmul.f32 -1.442695, %v474_v55 }
 0x3ba   :  { %1934 = vpow2.f32 %v1638_v58 }
 0x3bb   :  { %1936 = vpow2.f32 %v1637_v59 }
 0x3c1   :  { %v1931_v56 = vpop.eup %1930 }
 0x3c2   :  { %502 = vrot.lane.b32.xlu0 %v1931_v56, %s2073_s29 }
 0x3c3   :  { %v1933_v57 = vpop.eup %1932 }
 0x3c4   :  { %500 = vrot.lane.b32.xlu1 %v1933_v57, %s2073_s29  ;;  %v1935_v60 = vpop.eup %1934 }
 0x3c5   :  { %v1937_v61 = vpop.eup %1936  ;;  %v483_v62 = vadd.f32 1.0, %v1935_v60 }
 0x3c6   :  { %v482_v63 = vadd.f32 1.0, %v1937_v61 }
 0x3c7   :  { %1938 = vrcp.f32 %v483_v62 }
 0x3c8   :  { %1940 = vrcp.f32 %v482_v63 }
 0x3d1   :  { %v1939_v0 = vpop.eup %1938 }
 0x3d2   :  { %v1941_v4 = vpop.eup %1940  ;;  %v497_v11 = vmul.f32 %v1939_v0, %v493_v10 }
 0x3d3   :  { %v496_v15 = vmul.f32 %v1941_v4, %v492_v12 }
 0x434   :  { %v503_v2 = vpop.permute.xlu0 %502 }
 0x435   :  { %v507_v3 = vmul.f32 %v1939_v0, %v503_v2 }
 0x436   :  { %v501_v7 = vpop.permute.xlu1 %500 }
 0x437   :  { %512 = vrot.lane.b32.xlu0 %v507_v3, %s2073_s29  ;;  %v506_v8 = vmul.f32 %v1941_v4, %v501_v7 }
 0x439   :  { %510 = vrot.lane.b32.xlu1 %v506_v8, %s2073_s29 }
 0x4a9   :  { %v513_v13 = vpop.permute.xlu0 %512 }
 0x4aa   :  { %v517_v14 = vadd.f32 %v513_v13, %v497_v11 }
 0x4ab   :  { %v511_v17 = vpop.permute.xlu1 %510 }
 0x4ac   :  { %1942 = vtanh.f32 %v517_v14  ;;  %v516_v18 = vadd.f32 %v511_v17, %v496_v15  ;;  %v632_v50 = vrot.slane %v517_v14, 7 }
 0x4ae   :  { %1944 = vtanh.f32 %v516_v18  ;;  %v631_v49 = vrot.slane %v516_v18, 7 }
 0x4b6   :  { %v1943_v19 = vpop.eup %1942 }
 0x4b7   :  { %524 = vrot.lane.b32.xlu0 %v1943_v19, %s2073_s29 }
 0x4b8   :  { %v1945_v21 = vpop.eup %1944 }
 0x4b9   :  { %522 = vrot.lane.b32.xlu1 %v1945_v21, %s2073_s29 }
 0x529   :  { %v525_v22 = vpop.permute.xlu0 %524 }
 0x52a   :  { %v529_v25 = vmul.f32 %v1939_v0, %v525_v22 }
 0x52b   :  { %v523_v23 = vpop.permute.xlu1 %522 }
 0x52c   :  { %v528_v24 = vmul.f32 %v1941_v4, %v523_v23 }
 0x52e   :  { %v532_v26 = vrot.slane %v528_v24, 1 }
 0x530   :  { %v533_v27 = vsel %vm394_vm2, %v529_v25, %v532_v26 }
 0x531   :  { %534 = vrot.lane.b32.xlu1 %v533_v27, %s2074_s4 }
 0x5a3   :  { %v535_v28 = vpop.permute.xlu1 %534 }
 0x5a4   :  { %1755 = vmatmul.mubr.msk.f32.vlgmr.msra.gmra.mrb[6].mxu1 %vm263_vm3, %v535_v28 }
 0x5a5   :  { %1867 = vmatpush3.bf16.msra.mxu1 %v2149_v5  ;;  %1776 = vmatprep.mubr.msk.f32.mxu1 %vm2071_vm0, %v2070_v1 }
 0x5a6   :  { %1868 = vmatprep.subr.bf16.mxu1 %v2072_v6 }
 0x5a9   :  { %1870 = vmatpush3.bf16.msra.mxu1 %v2165_v9 }
 0x5aa   :  { %1877 = vmatprep.subr.bf16.mxu1 %v2072_v6 }
 0x677   :  { %v604_v29 = vpop.f32.mrb[6].mxu1 }
 0x678   :  { %v609_v30 = vrot.slane %v604_v29, 6  ;;  %v610_v31 = vrot.slane %v604_v29, 7  ;;  %v1756_v32 = vpop.f32.mrb[7].mxu1 }
 0x67a   :  { %v613_v33 = vadd.f32 %v609_v30, %v2187_v20  ;;  %v614_v34 = vadd.f32 %v610_v31, %v2184_v16 }
 0x67c   :  { %1946 = vtanh.f32 %v613_v33  ;;  %v1640_v37 = vmul.f32 -1.442695, %v613_v33  ;;  %v1641_v38 = vmul.f32 -1.442695, %v614_v34 }
 0x67d   :  { %1948 = vtanh.f32 %v614_v34 }
 0x67e   :  { %1950 = vpow2.f32 %v1640_v37 }
 0x67f   :  { %1952 = vpow2.f32 %v1641_v38 }
 0x686   :  { %v1947_v35 = vpop.eup %1946 }
 0x687   :  { %v1949_v36 = vpop.eup %1948  ;;  %639 = vrot.lane.b32.xlu0 %v1947_v35, %s2073_s29 }
 0x688   :  { %641 = vrot.lane.b32.xlu1 %v1949_v36, %s2073_s29  ;;  %v1951_v39 = vpop.eup %1950 }
 0x689   :  { %v1953_v40 = vpop.eup %1952  ;;  %v621_v41 = vadd.f32 1.0, %v1951_v39 }
 0x68a   :  { %v622_v42 = vadd.f32 1.0, %v1953_v40 }
 0x68b   :  { %1954 = vrcp.f32 %v621_v41 }
 0x68c   :  { %1956 = vrcp.f32 %v622_v42 }
 0x695   :  { %v1955_v43 = vpop.eup %1954 }
 0x696   :  { %v1957_v45 = vpop.eup %1956  ;;  %v635_v51 = vmul.f32 %v1955_v43, %v631_v49 }
 0x697   :  { %v636_v52 = vmul.f32 %v1957_v45, %v632_v50 }
 0x6f9   :  { %v640_v44 = vpop.permute.xlu0 %639 }
 0x6fa   :  { %v642_v46 = vpop.permute.xlu1 %641  ;;  %v645_v47 = vmul.f32 %v1955_v43, %v640_v44 }
 0x6fb   :  { %v646_v48 = vmul.f32 %v1957_v45, %v642_v46 }
 0x6fc   :  { %649 = vrot.lane.b32.xlu0 %v645_v47, %s2073_s29 }
 0x6fd   :  { %651 = vrot.lane.b32.xlu1 %v646_v48, %s2073_s29 }
 0x76e   :  { %v650_v53 = vpop.permute.xlu0 %649 }
 0x76f   :  { %v652_v54 = vpop.permute.xlu1 %651  ;;  %v655_v55 = vadd.f32 %v650_v53, %v635_v51 }
 0x770   :  { %v656_v56 = vadd.f32 %v652_v54, %v636_v52 }
 0x771   :  { %1958 = vtanh.f32 %v655_v55  ;;  %v771_v29 = vrot.slane %v655_v55, 7 }
 0x772   :  { %1960 = vtanh.f32 %v656_v56  ;;  %v772_v30 = vrot.slane %v656_v56, 7 }
 0x77b   :  { %v1959_v57 = vpop.eup %1958 }
 0x77c   :  { %v1961_v58 = vpop.eup %1960  ;;  %661 = vrot.lane.b32.xlu0 %v1959_v57, %s2073_s29 }
 0x77d   :  { %663 = vrot.lane.b32.xlu1 %v1961_v58, %s2073_s29 }
 0x7ee   :  { %v662_v59 = vpop.permute.xlu0 %661 }
 0x7ef   :  { %v664_v60 = vpop.permute.xlu1 %663  ;;  %v667_v61 = vmul.f32 %v1955_v43, %v662_v59 }
 0x7f0   :  { %v668_v62 = vmul.f32 %v1957_v45, %v664_v60 }
 0x7f1   :  { %v671_v63 = vrot.slane %v667_v61, 2 }
 0x7f2   :  { %v672_v0 = vrot.slane %v668_v62, 1 }
 0x7f4   :  { %v673_v2 = vsel %vm394_vm2, %v672_v0, %v671_v63 }
 0x7f5   :  { %674 = vrot.lane.b32.xlu0 %v673_v2, %s2074_s4 }
 0x867   :  { %v675_v3 = vpop.permute.xlu0 %674 }
 0x868   :  { %1766 = vmatmul.mubr.msk.f32.vlgmr.msra.gmra.mrb[2].mxu0 %vm263_vm3, %v675_v3 }
 0x869   :  { %1873 = vmatpush3.bf16.msra.mxu0 %v2149_v5  ;;  %1787 = vmatprep.mubr.msk.f32.mxu0 %vm2071_vm0, %v2070_v1 }
 0x86a   :  { %1874 = vmatprep.subr.bf16.mxu0 %v2072_v6 }
 0x86d   :  { %1876 = vmatpush3.bf16.msra.mxu0 %v2165_v9 }
 0x86e   :  { %1883 = vmatprep.subr.bf16.mxu0 %v2072_v6 }
 0x93b   :  { %v744_v4 = vpop.f32.mrb[2].mxu0 }
 0x93c   :  { %v749_v7 = vrot.slane %v744_v4, 5  ;;  %v750_v8 = vrot.slane %v744_v4, 6  ;;  %v1767_v10 = vpop.f32.mrb[3].mxu0 }
 0x93e   :  { %v753_v11 = vadd.f32 %v749_v7, %v2187_v20  ;;  %v754_v12 = vadd.f32 %v750_v8, %v2184_v16 }
 0x940   :  { %1962 = vtanh.f32 %v753_v11  ;;  %v1643_v15 = vmul.f32 -1.442695, %v753_v11  ;;  %v1644_v17 = vmul.f32 -1.442695, %v754_v12 }
 0x941   :  { %1964 = vtanh.f32 %v754_v12 }
 0x942   :  { %1966 = vpow2.f32 %v1643_v15 }
 0x943   :  { %1968 = vpow2.f32 %v1644_v17 }
 0x94a   :  { %v1963_v13 = vpop.eup %1962 }
 0x94b   :  { %v1965_v14 = vpop.eup %1964  ;;  %779 = vrot.lane.b32.xlu1 %v1963_v13, %s2073_s29 }
 0x94c   :  { %781 = vrot.lane.b32.xlu0 %v1965_v14, %s2073_s29  ;;  %v1967_v18 = vpop.eup %1966 }
 0x94d   :  { %v1969_v19 = vpop.eup %1968  ;;  %v761_v21 = vadd.f32 1.0, %v1967_v18 }
 0x94e   :  { %v762_v22 = vadd.f32 1.0, %v1969_v19 }
 0x94f   :  { %1970 = vrcp.f32 %v761_v21 }
 0x950   :  { %1972 = vrcp.f32 %v762_v22 }
 0x959   :  { %v1971_v23 = vpop.eup %1970 }
 0x95a   :  { %v1973_v25 = vpop.eup %1972  ;;  %v775_v31 = vmul.f32 %v1971_v23, %v771_v29 }
 0x95b   :  { %v776_v32 = vmul.f32 %v1973_v25, %v772_v30 }
 0x9bd   :  { %v780_v24 = vpop.permute.xlu1 %779 }
 0x9be   :  { %v782_v26 = vpop.permute.xlu0 %781  ;;  %v785_v27 = vmul.f32 %v1971_v23, %v780_v24 }
 0x9bf   :  { %v786_v28 = vmul.f32 %v1973_v25, %v782_v26 }
 0x9c0   :  { %789 = vrot.lane.b32.xlu1 %v785_v27, %s2073_s29 }
 0x9c1   :  { %791 = vrot.lane.b32.xlu0 %v786_v28, %s2073_s29 }
 0xa32   :  { %v790_v33 = vpop.permute.xlu1 %789 }
 0xa33   :  { %v792_v34 = vpop.permute.xlu0 %791  ;;  %v795_v35 = vadd.f32 %v790_v33, %v775_v31 }
 0xa34   :  { %v796_v36 = vadd.f32 %v792_v34, %v776_v32 }
 0xa35   :  { %1974 = vtanh.f32 %v795_v35  ;;  %v911_v4 = vrot.slane %v795_v35, 7 }
 0xa36   :  { %1976 = vtanh.f32 %v796_v36  ;;  %v912_v7 = vrot.slane %v796_v36, 7 }
 0xa3f   :  { %v1975_v37 = vpop.eup %1974 }
 0xa40   :  { %v1977_v38 = vpop.eup %1976  ;;  %801 = vrot.lane.b32.xlu1 %v1975_v37, %s2073_s29 }
 0xa41   :  { %803 = vrot.lane.b32.xlu0 %v1977_v38, %s2073_s29 }
 0xab2   :  { %v802_v39 = vpop.permute.xlu1 %801 }
 0xab3   :  { %v804_v40 = vpop.permute.xlu0 %803  ;;  %v807_v41 = vmul.f32 %v1971_v23, %v802_v39 }
 0xab4   :  { %v808_v42 = vmul.f32 %v1973_v25, %v804_v40 }
 0xab5   :  { %v811_v43 = vrot.slane %v807_v41, 3 }
 0xab6   :  { %v812_v44 = vrot.slane %v808_v42, 2 }
 0xab8   :  { %v813_v45 = vsel %vm394_vm2, %v812_v44, %v811_v43 }
 0xab9   :  { %814 = vrot.lane.b32.xlu1 %v813_v45, %s2074_s4 }
 0xb2b   :  { %v815_v46 = vpop.permute.xlu1 %814 }
 0xb2c   :  { %1777 = vmatmul.mubr.msk.f32.vlgmr.msra.gmra.mrb[8].mxu1 %vm263_vm3, %v815_v46 }
 0xb2d   :  { %1879 = vmatpush3.bf16.msra.mxu1 %v2149_v5  ;;  %1798 = vmatprep.mubr.msk.f32.mxu1 %vm2071_vm0, %v2070_v1 }
 0xb2e   :  { %1880 = vmatprep.subr.bf16.mxu1 %v2072_v6 }
 0xb31   :  { %1882 = vmatpush3.bf16.msra.mxu1 %v2165_v9 }
 0xb32   :  { %1889 = vmatprep.subr.bf16.mxu1 %v2072_v6 }
 0xbff   :  { %v884_v47 = vpop.f32.mrb[8].mxu1 }
 0xc00   :  { %v889_v48 = vrot.slane %v884_v47, 4  ;;  %v890_v49 = vrot.slane %v884_v47, 5  ;;  %v1778_v50 = vpop.f32.mrb[9].mxu1 }
 0xc02   :  { %v893_v51 = vadd.f32 %v889_v48, %v2187_v20  ;;  %v894_v52 = vadd.f32 %v890_v49, %v2184_v16 }
 0xc04   :  { %1978 = vtanh.f32 %v893_v51  ;;  %v1646_v55 = vmul.f32 -1.442695, %v893_v51  ;;  %v1647_v56 = vmul.f32 -1.442695, %v894_v52 }
 0xc05   :  { %1980 = vtanh.f32 %v894_v52 }
 0xc06   :  { %1982 = vpow2.f32 %v1646_v55 }
 0xc07   :  { %1984 = vpow2.f32 %v1647_v56 }
 0xc0e   :  { %v1979_v53 = vpop.eup %1978 }
 0xc0f   :  { %v1981_v54 = vpop.eup %1980  ;;  %919 = vrot.lane.b32.xlu0 %v1979_v53, %s2073_s29 }
 0xc10   :  { %921 = vrot.lane.b32.xlu1 %v1981_v54, %s2073_s29  ;;  %v1983_v57 = vpop.eup %1982 }
 0xc11   :  { %v1985_v58 = vpop.eup %1984  ;;  %v901_v59 = vadd.f32 1.0, %v1983_v57 }
 0xc12   :  { %v902_v60 = vadd.f32 1.0, %v1985_v58 }
 0xc13   :  { %1986 = vrcp.f32 %v901_v59 }
 0xc14   :  { %1988 = vrcp.f32 %v902_v60 }
 0xc1d   :  { %v1987_v61 = vpop.eup %1986 }
 0xc1e   :  { %v1989_v63 = vpop.eup %1988  ;;  %v915_v8 = vmul.f32 %v1987_v61, %v911_v4 }
 0xc1f   :  { %v916_v10 = vmul.f32 %v1989_v63, %v912_v7 }
 0xc81   :  { %v920_v62 = vpop.permute.xlu0 %919 }
 0xc82   :  { %v922_v0 = vpop.permute.xlu1 %921  ;;  %v925_v2 = vmul.f32 %v1987_v61, %v920_v62 }
 0xc83   :  { %v926_v3 = vmul.f32 %v1989_v63, %v922_v0 }
 0xc84   :  { %929 = vrot.lane.b32.xlu0 %v925_v2, %s2073_s29 }
 0xc85   :  { %931 = vrot.lane.b32.xlu1 %v926_v3, %s2073_s29 }
 0xcf6   :  { %v930_v11 = vpop.permute.xlu0 %929 }
 0xcf7   :  { %v932_v12 = vpop.permute.xlu1 %931  ;;  %v935_v13 = vadd.f32 %v930_v11, %v915_v8 }
 0xcf8   :  { %v936_v14 = vadd.f32 %v932_v12, %v916_v10 }
 0xcf9   :  { %1990 = vtanh.f32 %v935_v13  ;;  %v1051_v45 = vrot.slane %v935_v13, 7 }
 0xcfa   :  { %1992 = vtanh.f32 %v936_v14  ;;  %v1052_v46 = vrot.slane %v936_v14, 7 }
 0xd03   :  { %v1991_v15 = vpop.eup %1990 }
 0xd04   :  { %v1993_v17 = vpop.eup %1992  ;;  %941 = vrot.lane.b32.xlu0 %v1991_v15, %s2073_s29 }
 0xd05   :  { %943 = vrot.lane.b32.xlu1 %v1993_v17, %s2073_s29 }
 0xd76   :  { %v942_v18 = vpop.permute.xlu0 %941 }
 0xd77   :  { %v944_v19 = vpop.permute.xlu1 %943  ;;  %v947_v21 = vmul.f32 %v1987_v61, %v942_v18 }
 0xd78   :  { %v948_v22 = vmul.f32 %v1989_v63, %v944_v19 }
 0xd79   :  { %v951_v23 = vrot.slane %v947_v21, 4 }
 0xd7a   :  { %v952_v24 = vrot.slane %v948_v22, 3 }
 0xd7c   :  { %v953_v25 = vsel %vm394_vm2, %v952_v24, %v951_v23 }
 0xd7d   :  { %954 = vrot.lane.b32.xlu0 %v953_v25, %s2074_s4 }
 0xdef   :  { %v955_v26 = vpop.permute.xlu0 %954 }
 0xdf0   :  { %1788 = vmatmul.mubr.msk.f32.vlgmr.msra.gmra.mrb[4].mxu0 %vm263_vm3, %v955_v26 }
 0xdf1   :  { %1885 = vmatpush3.bf16.msra.mxu0 %v2149_v5  ;;  %1809 = vmatprep.mubr.msk.f32.mxu0 %vm2071_vm0, %v2070_v1 }
 0xdf2   :  { %1886 = vmatprep.subr.bf16.mxu0 %v2072_v6 }
 0xdf5   :  { %1888 = vmatpush3.bf16.msra.mxu0 %v2165_v9 }
 0xdf6   :  { %1895 = vmatprep.subr.bf16.mxu0 %v2072_v6 }
 0xec3   :  { %v1024_v27 = vpop.f32.mrb[4].mxu0 }
 0xec4   :  { %v1029_v28 = vrot.slane %v1024_v27, 3  ;;  %v1030_v29 = vrot.slane %v1024_v27, 4  ;;  %v1789_v30 = vpop.f32.mrb[5].mxu0 }
 0xec6   :  { %v1033_v31 = vadd.f32 %v1029_v28, %v2187_v20  ;;  %v1034_v32 = vadd.f32 %v1030_v29, %v2184_v16 }
 0xec8   :  { %1994 = vtanh.f32 %v1033_v31  ;;  %v1649_v34 = vmul.f32 -1.442695, %v1033_v31  ;;  %v1650_v9 = vmul.f32 -1.442695, %v1034_v32 }
 0xec9   :  { %1996 = vtanh.f32 %v1034_v32 }
 0xeca   :  { %1998 = vpow2.f32 %v1649_v34 }
 0xecb   :  { %2000 = vpow2.f32 %v1650_v9 }
 0xed2   :  { %v1995_v5 = vpop.eup %1994 }
 0xed3   :  { %v1997_v33 = vpop.eup %1996  ;;  %1059 = vrot.lane.b32.xlu1 %v1995_v5, %s2073_s29 }
 0xed4   :  { %1061 = vrot.lane.b32.xlu0 %v1997_v33, %s2073_s29  ;;  %v1999_v35 = vpop.eup %1998 }
 0xed5   :  { %v2001_v36 = vpop.eup %2000  ;;  %v1041_v37 = vadd.f32 1.0, %v1999_v35 }
 0xed6   :  { %v1042_v38 = vadd.f32 1.0, %v2001_v36 }
 0xed7   :  { %2002 = vrcp.f32 %v1041_v37 }
 0xed8   :  { %2004 = vrcp.f32 %v1042_v38 }
 0xee1   :  { %v2003_v39 = vpop.eup %2002 }
 0xee2   :  { %v2005_v41 = vpop.eup %2004  ;;  %v1055_v47 = vmul.f32 %v2003_v39, %v1051_v45 }
 0xee3   :  { %v1056_v48 = vmul.f32 %v2005_v41, %v1052_v46 }
 0xf45   :  { %v1060_v40 = vpop.permute.xlu1 %1059 }
 0xf46   :  { %v1062_v42 = vpop.permute.xlu0 %1061  ;;  %v1065_v43 = vmul.f32 %v2003_v39, %v1060_v40 }
 0xf47   :  { %v1066_v44 = vmul.f32 %v2005_v41, %v1062_v42 }
 0xf48   :  { %1069 = vrot.lane.b32.xlu1 %v1065_v43, %s2073_s29 }
 0xf49   :  { %1071 = vrot.lane.b32.xlu0 %v1066_v44, %s2073_s29 }
 0xfba   :  { %v1070_v49 = vpop.permute.xlu1 %1069 }
 0xfbb   :  { %v1072_v50 = vpop.permute.xlu0 %1071  ;;  %v1075_v51 = vadd.f32 %v1070_v49, %v1055_v47 }
 0xfbc   :  { %v1076_v52 = vadd.f32 %v1072_v50, %v1056_v48 }
 0xfbd   :  { %2006 = vtanh.f32 %v1075_v51  ;;  %v1191_v25 = vrot.slane %v1075_v51, 7 }
 0xfbe   :  { %2008 = vtanh.f32 %v1076_v52  ;;  %v1192_v26 = vrot.slane %v1076_v52, 7 }
 0xfc7   :  { %v2007_v53 = vpop.eup %2006 }
 0xfc8   :  { %v2009_v54 = vpop.eup %2008  ;;  %1081 = vrot.lane.b32.xlu1 %v2007_v53, %s2073_s29 }
 0xfc9   :  { %1083 = vrot.lane.b32.xlu0 %v2009_v54, %s2073_s29 }
0x103a   :  { %v1082_v55 = vpop.permute.xlu1 %1081 }
0x103b   :  { %v1084_v56 = vpop.permute.xlu0 %1083  ;;  %v1087_v57 = vmul.f32 %v2003_v39, %v1082_v55 }
0x103c   :  { %v1088_v58 = vmul.f32 %v2005_v41, %v1084_v56 }
0x103d   :  { %v1091_v59 = vrot.slane %v1087_v57, 5 }
0x103e   :  { %v1092_v60 = vrot.slane %v1088_v58, 4 }
0x1040   :  { %v1093_v61 = vsel %vm394_vm2, %v1092_v60, %v1091_v59  ;;  %v50_v59 = vld [vmem:[%s2384_s1] sm:$0x1]  ;;  %v51_v60 = vld [vmem:[%s2384_s1 + $0x1] sm:$0x1] }
0x1041   :  { %1094 = vrot.lane.b32.xlu1 %v1093_v61, %s2074_s4  ;;  %v57_v61 = vlaneseq }
0x1043   :  { %vm59_vm4 = vcmp.lt.s32.totalorder %v57_v61, 8 }
0x10b3   :  { %v1095_v62 = vpop.permute.xlu1 %1094 }
0x10b4   :  { %1799 = vmatmul.mubr.msk.f32.vlgmr.msra.gmra.mrb[10].mxu1 %vm263_vm3, %v1095_v62  ;;  %v52_v62 = vstv %s49_s30 }
0x10b5   :  { %1820 = vmatprep.mubr.msk.f32.mxu1 %vm2071_vm0, %v2070_v1 }
0x1187   :  { %v1164_v63 = vpop.f32.mrb[10].mxu1 }
0x1188   :  { %v1169_v0 = vrot.slane %v1164_v63, 2  ;;  %v1170_v2 = vrot.slane %v1164_v63, 3  ;;  %v1800_v3 = vpop.f32.mrb[11].mxu1  ;;  %v53_v63 = vadd.f32 %v52_v62, %v50_v59  ;;  %v1370_v59 = vld [vmem:[%s2388_s5 + $0x8] sm:$0xff] }
0x118a   :  { %v1173_v4 = vadd.f32 %v1169_v0, %v2187_v20  ;;  %v1174_v7 = vadd.f32 %v1170_v2, %v2184_v16  ;;  %v54_v0 = vadd.f32 %v52_v62, %v51_v60  ;;  %v55_v2 = vmax.f32 %v53_v63, 0.0  ;;  %v1371_v60 = vld [vmem:[%s2389_s6] sm:$0xff]  ;;  %v1372_v62 = vld [vmem:[%s2389_s6 + $0x8] sm:$0xff] }
0x118b   :  { %v1890_v63 = vpack.c.bf16 %v1372_v62, %v1371_v60 }
0x118c   :  { %2010 = vtanh.f32 %v1173_v4  ;;  %v1652_v11 = vmul.f32 -1.442695, %v1173_v4  ;;  %v1653_v12 = vmul.f32 -1.442695, %v1174_v7  ;;  %v56_v3 = vmax.f32 %v54_v0, 0.0  ;;  %v1373_v0 = vld [vmem:[%s2389_s6 + $0x10] sm:$0xff] }
0x118d   :  { %2012 = vtanh.f32 %v1174_v7  ;;  %v66_v4 = vshrl.u32 %v57_v61, 7  ;;  %v2075_v7 = vmov 1966171168   ;;  %1891 = vmatpush3.bf16.msra.mxu1 %v1890_v63 }
0x118e   :  { %2014 = vpow2.f32 %v1652_v11  ;;  %v62_v11 = vsel %vm59_vm4, %v56_v3, -inf  ;;  %1892 = vmatprep.subr.bf16.mxu1 %v2072_v6 }
0x118f   :  { %2016 = vpow2.f32 %v1653_v12 }
0x1196   :  { %v2011_v8 = vpop.eup %2010 }
0x1197   :  { %v2013_v10 = vpop.eup %2012  ;;  %1199 = vrot.lane.b32.xlu0 %v2011_v8, %s2073_s29  ;;  %v70_v8 = vunpack.c.l.s4 %v2075_v7 }
0x1198   :  { %1201 = vrot.lane.b32.xlu1 %v2013_v10, %s2073_s29  ;;  %v2015_v13 = vpop.eup %2014  ;;  %v61_v10 = vsel %vm59_vm4, %v55_v2, -inf }
0x1199   :  { %v2017_v14 = vpop.eup %2016  ;;  %v1181_v15 = vadd.f32 1.0, %v2015_v13  ;;  %v63_v12 = vmax.f32 %v61_v10, %v62_v11  ;;  %v67_v13 = vsub.s32 0, %v66_v4  ;;  %v2054_v10 = vld [vmem:[%s2383_s0] sm:$0xff]  }
0x119a   :  { %v1182_v17 = vadd.f32 1.0, %v2017_v14  ;;  %v71_v14 = vunpack.c.0.s8 %v70_v8  ;;  %v174_v11 = vunpack.c.l.bf16 %v2054_v10 }
0x119b   :  { %2018 = vrcp.f32 %v1181_v15  ;;  %v68_v15 = vrot.slane %v63_v12, %v67_v13 }
0x119c   :  { %2020 = vrcp.f32 %v1182_v17  ;;  %v74_v17 = vsub.s32 %v71_v14, %v66_v4 }
0x11a5   :  { %v2019_v18 = vpop.eup %2018 }
0x11a6   :  { %v2021_v21 = vpop.eup %2020  ;;  %v1195_v27 = vmul.f32 %v2019_v18, %v1191_v25 }
0x11a7   :  { %v1196_v28 = vmul.f32 %v2021_v21, %v1192_v26 }
0x1209   :  { %v1200_v19 = vpop.permute.xlu0 %1199 }
0x120a   :  { %v1202_v22 = vpop.permute.xlu1 %1201  ;;  %v1205_v23 = vmul.f32 %v2019_v18, %v1200_v19 }
0x120b   :  { %v1206_v24 = vmul.f32 %v2021_v21, %v1202_v22 }
0x120c   :  { %1209 = vrot.lane.b32.xlu0 %v1205_v23, %s2073_s29 }
0x120d   :  { %1211 = vrot.lane.b32.xlu1 %v1206_v24, %s2073_s29 }
0x127e   :  { %v1210_v29 = vpop.permute.xlu0 %1209 }
0x127f   :  { %v1212_v30 = vpop.permute.xlu1 %1211  ;;  %v2292_v31 = vadd.f32 %v1210_v29, %v1195_v27 }
0x1280   :  { %v2294_v32 = vadd.f32 %v1212_v30, %v1196_v28 }
0x1281   :  { %2022 = vtanh.f32 %v2292_v31 }
0x1282   :  { %2024 = vtanh.f32 %v2294_v32 }
0x128b   :  { %v2023_v5 = vpop.eup %2022 }
0x128c   :  { %v2025_v33 = vpop.eup %2024  ;;  %1221 = vrot.lane.b32.xlu0 %v2023_v5, %s2073_s29 }
0x128d   :  { %1223 = vrot.lane.b32.xlu1 %v2025_v33, %s2073_s29 }
0x12fe   :  { %v1222_v34 = vpop.permute.xlu0 %1221 }
0x12ff   :  { %v1224_v9 = vpop.permute.xlu1 %1223  ;;  %v1227_v35 = vmul.f32 %v2019_v18, %v1222_v34  ;;  %v75_v18 = vrot.slane %v68_v15, %v74_v17 }
0x1300   :  { %v1228_v36 = vmul.f32 %v2021_v21, %v1224_v9 }
0x1301   :  { %v1231_v37 = vrot.slane %v1227_v35, 6  ;;  %v76_v19 = vcombine.high %v75_v18, %v75_v18  ;;  %v83_v21 = vrot.slane %v75_v18, %v74_v17 }
0x1302   :  { %v1232_v38 = vrot.slane %v1228_v36, 5 }
0x1303   :  { %v90_v22 = vrot.slane %v76_v19, %v74_v17  ;;  %v93_v23 = vsub.f32 %v55_v2, %v83_v21  ;;  %v1374_v2 = vld [vmem:[%s2389_s6 + $0x18] sm:$0xff] }
0x1304   :  { %v1233_v39 = vsel %vm394_vm2, %v1232_v38, %v1231_v37 }
0x1305   :  { %1234 = vrot.lane.b32.xlu0 %v1233_v39, %s2074_s4  ;;  %v94_v24 = vsub.f32 %v56_v3, %v90_v22  ;;  %v95_v25 = vmul.f32 1.442695, %v93_v23  ;;  %v1893_v3 = vpack.c.bf16 %v1374_v2, %v1373_v0 }
0x1307   :  { %v97_v26 = vmul.f32 1.442695, %v94_v24  ;;  %1894 = vmatpush3.bf16.msra.mxu1 %v1893_v3 }
0x1377   :  { %v1235_v40 = vpop.permute.xlu0 %1234 }
0x1378   :  { %1810 = vmatmul.mubr.msk.f32.vlgmr.msra.gmra.mrb[6].mxu0 %vm263_vm3, %v1235_v40 }
0x1379   :  { %1827 = vmatprep.mubr.msk.f32.mxu0 %vm2071_vm0, %v2070_v1 }
0x144b   :  { %v1304_v41 = vpop.f32.mrb[6].mxu0 }
0x144c   :  { %v1309_v42 = vrot.slane %v1304_v41, 1  ;;  %v1310_v43 = vrot.slane %v1304_v41, 2  ;;  %v1811_v44 = vpop.f32.mrb[7].mxu0 }
0x144d   :  { %v1331_v44 = vrot.slane %v2292_v31, 7 }
0x144e   :  { %v1313_v45 = vadd.f32 %v1309_v42, %v2187_v20  ;;  %v1314_v46 = vadd.f32 %v1310_v43, %v2184_v16 }
0x1450   :  { %2026 = vtanh.f32 %v1313_v45  ;;  %v1655_v49 = vmul.f32 -1.442695, %v1313_v45  ;;  %v1656_v50 = vmul.f32 -1.442695, %v1314_v46  ;;  %v1332_v45 = vrot.slane %v2294_v32, 7 }
0x1451   :  { %2028 = vtanh.f32 %v1314_v46 }
0x1452   :  { %2030 = vpow2.f32 %v1655_v49 }
0x1453   :  { %2032 = vpow2.f32 %v1656_v50 }
0x145a   :  { %v2027_v47 = vpop.eup %2026 }
0x145b   :  { %v2029_v48 = vpop.eup %2028  ;;  %1339 = vrot.lane.b32.xlu1 %v2027_v47, %s2073_s29 }
0x145c   :  { %1341 = vrot.lane.b32.xlu0 %v2029_v48, %s2073_s29  ;;  %v2031_v51 = vpop.eup %2030 }
0x145d   :  { %v2033_v52 = vpop.eup %2032  ;;  %v1321_v53 = vadd.f32 1.0, %v2031_v51 }
0x145e   :  { %v1322_v54 = vadd.f32 1.0, %v2033_v52 }
0x145f   :  { %2034 = vrcp.f32 %v1321_v53 }
0x1460   :  { %2036 = vrcp.f32 %v1322_v54 }
0x1461   :  { %2038 = vpow2.f32 %v95_v25 }
0x1462   :  { %2040 = vpow2.f32 %v97_v26 }
0x1469   :  { %v2309_v20 = vpop.eup %2034 }
0x146a   :  { %v2311_v55 = vpop.eup %2036  ;;  %v1335_v46 = vmul.f32 %v2309_v20, %v1331_v44 }
0x146b   :  { %v2039_v27 = vpop.eup %2038  ;;  %v1336_v47 = vmul.f32 %v2311_v55, %v1332_v45  ;;  %v1659_v45 = vld [vmem:[%s2390_s7] ss:$0 sm:$0xff] }
0x146c   :  { %v2041_v28 = vpop.eup %2040 }
0x146d   :  { %v101_v29 = vcombine.low %v2039_v27, %v2041_v28 }
0x146f   :  { %v108_v30 = vrot.slane %v101_v29, %v74_v17 }
0x1471   :  { %v115_v5 = vrot.slane %v108_v30, %v74_v17 }
0x1473   :  { %v118_v33 = vsel %vm117_vm5, %v115_v5, 0.0 }
0x1474   :  { %v119_v34 = vrot.slane %v118_v33, 4 }
0x1476   :  { %v120_v9 = vadd.f32 %v119_v34, %v118_v33 }
0x1478   :  { %v121_v35 = vrot.slane %v120_v9, 2 }
0x147a   :  { %v122_v36 = vadd.f32 %v121_v35, %v120_v9 }
0x147c   :  { %v123_v37 = vrot.slane %v122_v36, 1 }
0x147e   :  { %v124_v38 = vadd.f32 %v123_v37, %v122_v36  ;;  %v1538_v37 = vld [vmem:[%s2391_s8] sm:$0xff] }
0x1480   :  { %v128_v39 = vrot.slane %v124_v38, %v67_v13  ;;  %v1539_v38 = vld [vmem:[%s2391_s8 + $0x8] sm:$0xff] }
0x1482   :  { %v136_v40 = vrot.slane %v128_v39, %v74_v17  ;;  %v1899_v39 = vpack.c.bf16 %v1539_v38, %v1538_v37 }
0x1484   :  { %v137_v41 = vcombine.high %v136_v40, %v136_v40  ;;  %v144_v42 = vrot.slane %v136_v40, %v74_v17  ;;  %v1540_v40 = vld [vmem:[%s2391_s8 + $0x10] sm:$0xff] }
0x1486   :  { %v151_v43 = vrot.slane %v137_v41, %v74_v17  ;;  %2042 = vrcp.f32 %v144_v42 }
0x1488   :  { %2044 = vrcp.f32 %v151_v43 }
0x1490   :  { %v2043_v52 = vpop.eup %2042 }
0x1491   :  { %v155_v54 = vmul.f32 %v2043_v52, %v2039_v27 }
0x1492   :  { %v2045_v53 = vpop.eup %2044 }
0x1493   :  { %v163_v32 = vrot.slane %v155_v54, %v67_v13 }
0x14cd   :  { %v1340_v16 = vpop.permute.xlu1 %1339 }
0x14ce   :  { %v1342_v56 = vpop.permute.xlu0 %1341  ;;  %v1345_v57 = vmul.f32 %v2309_v20, %v1340_v16  ;;  %v157_v16 = vmul.f32 %v2045_v53, %v2041_v28 }
0x14cf   :  { %v1346_v58 = vmul.f32 %v2311_v55, %v1342_v56 }
0x14d0   :  { %1349 = vrot.lane.b32.xlu1 %v1345_v57, %s2073_s29  ;;  %v170_v57 = vrot.slane %v157_v16, %v67_v13  ;;  %v175_v13 = vunpack.c.h.bf16 %v2054_v10 }
0x14d1   :  { %1351 = vrot.lane.b32.xlu0 %v1346_v58, %s2073_s29  ;;  %v1369_v58 = vld [vmem:[%s2388_s5] sm:$0xff] }
0x14d2   :  { %v1896_v61 = vpack.c.bf16 %v1370_v59, %v1369_v58 }
0x14d4   :  { %1897 = vmatpush3.bf16.msra.mxu0 %v1896_v61 }
0x14d5   :  { %1898 = vmatprep.subr.bf16.mxu0 %v2072_v6 }
0x1542   :  { %v1350_v48 = vpop.permute.xlu1 %1349 }
0x1543   :  { %v1352_v49 = vpop.permute.xlu0 %1351  ;;  %v1355_v50 = vadd.f32 %v1350_v48, %v1335_v46 }
0x1544   :  { %v1356_v51 = vadd.f32 %v1352_v49, %v1336_v47  ;;  %v1543_v49 = vstv %s1660_s11 }
0x1545   :  { %2046 = vtanh.f32 %v1355_v50 }
0x1546   :  { %2048 = vtanh.f32 %v1356_v51 }
0x154f   :  { %v2047_v56 = vpop.eup %2046 }
0x1550   :  { %v2049_v31 = vpop.eup %2048  ;;  %1361 = vrot.lane.b32.xlu1 %v2047_v56, %s2073_s29 }
0x1551   :  { %1363 = vrot.lane.b32.xlu0 %v2049_v31, %s2073_s29 }
0x1554   :  { %165 = vbcast.lane.b32.xlu1 %v163_v32, 256 }
0x1555   :  { %172 = vbcast.lane.b32.xlu0 %v170_v57, 256 }
0x15c2   :  { %v1362_v4 = vpop.permute.xlu1 %1361 }
0x15c3   :  { %v1364_v7 = vpop.permute.xlu0 %1363  ;;  %v1367_v8 = vmul.f32 %v2309_v20, %v1362_v4 }
0x15c4   :  { %v1368_v12 = vmul.f32 %v2311_v55, %v1364_v7 }
0x15c5   :  { %v1377_v14 = vrot.slane %v1367_v8, 7 }
0x15c6   :  { %v1378_v15 = vrot.slane %v1368_v12, 6  ;;  %v166_v17 = vpop.permute.xlu1 %165 }
0x15c7   :  { %v176_v18 = vmul.f32 %v174_v11, %v166_v17  ;;  %v173_v19 = vpop.permute.xlu0 %172 }
0x15c8   :  { %v1379_v21 = vsel %vm394_vm2, %v1378_v15, %v1377_v14  ;;  %v177_v22 = vmul.f32 %v175_v13, %v173_v19 }
0x15c9   :  { %1380 = vrot.lane.b32.xlu1 %v1379_v21, %s2074_s4  ;;  %v179_v20 = vsel %vm178_vm1, %v176_v18, 0.0 }
0x15ca   :  { %v180_v23 = vrot.slane %v179_v20, 4  ;;  %v186_v24 = vsel %vm178_vm1, %v177_v22, 0.0 }
0x15cb   :  { %v187_v25 = vrot.slane %v186_v24, 4 }
0x15cc   :  { %v181_v26 = vadd.f32 %v180_v23, %v179_v20 }
0x15cd   :  { %v188_v27 = vadd.f32 %v187_v25, %v186_v24 }
0x15ce   :  { %v182_v55 = vrot.slane %v181_v26, 2 }
0x15cf   :  { %v189_v28 = vrot.slane %v188_v27, 2 }
0x15d0   :  { %v183_v29 = vadd.f32 %v182_v55, %v181_v26 }
0x15d1   :  { %v190_v30 = vadd.f32 %v189_v28, %v188_v27 }
0x15d2   :  { %v184_v5 = vrot.slane %v183_v29, 1 }
0x15d3   :  { %v191_v33 = vrot.slane %v190_v30, 1 }
0x15d4   :  { %v185_v34 = vadd.f32 %v184_v5, %v183_v29 }
0x15d5   :  { %v192_v9 = vadd.f32 %v191_v33, %v190_v30 }
0x15d7   :  { %v1456_v35 = vsel %vm394_vm2, %v192_v9, %v185_v34 }
0x15d8   :  { %1828 = vmatmul.mubr.msk.f32.vlgmr.msra.gmra.mrb[8].mxu0 %vm178_vm1, %v1456_v35 }
0x15d9   :  { %1838 = vmatprep.mubr.msk.f32.mxu0 %vm2071_vm0, %v2070_v1  ;;  %1900 = vmatpush3.bf16.msra.mxu0 %v1899_v39  ;;  %v1541_v1 = vld [vmem:[%s2391_s8 + $0x18] sm:$0xff] }
0x15da   :  { %1901 = vmatprep.subr.bf16.mxu0 %v2072_v6  ;;  %v1902_v41 = vpack.c.bf16 %v1541_v1, %v1540_v40 }
0x15dd   :  { %1903 = vmatpush3.bf16.msra.mxu0 %v1902_v41 }
0x163b   :  { %v1381_v36 = vpop.permute.xlu1 %1380 }
0x163c   :  { %1821 = vmatmul.mubr.msk.f32.vlgmr.msra.gmra.mrb[12].mxu1 %vm263_vm3, %v1381_v36 }
0x16ab   :  { %v1525_v42 = vpop.f32.mrb[8].mxu0 }
0x16ac   :  { %v1829_v43 = vpop.f32.mrb[9].mxu0 }
0x170f   :  { %v1450_v44 = vpop.f32.mrb[12].mxu1 }
0x1710   :  { %v1526_v46 = vadd.f32 %v1525_v42, %v1450_v44  ;;  %v1822_v47 = vpop.f32.mrb[13].mxu1 }
0x1712   :  { %v1536_v6 = vadd.f32 %v1659_v45, %v1526_v46 }
0x1714   :  { %v1537_v48 = vmax.f32 %v1536_v6, 0.0 }
0x1716   :  { %1839 = vmatmul.mubr.msk.f32.vlgmr.msra.gmra.mrb[10].mxu0 %vm263_vm3, %v1537_v48 }
0x17e9   :  { %v1613_v50 = vpop.f32.mrb[10].mxu0 }
0x17ea   :  { %v1614_v51 = vadd.f32 %v1613_v50, %v1543_v49  ;;  %v1840_v52 = vpop.f32.mrb[11].mxu0 }
0x17ec   :  { %v1662_v53 = vmul.f32 -1.442695, %v1614_v51 }
0x17ee   :  { %2050 = vpow2.f32 %v1662_v53 }
0x17f8   :  { %v2051_v54 = vpop.eup %2050 }
0x17f9   :  { %v1620_v16 = vadd.f32 1.0, %v2051_v54 }
0x17fb   :  { %2052 = vrcp.f32 %v1620_v16 }
0x1805   :  { %v2053_v56 = vpop.eup %2052 }
0x1806   :  { %1624 = vst.msk [vmem:[%s2393_s10] sm:$0x3] %vm1623_vm6, %v2053_v56 }
0x1807   :  { %1629 = vsyncpa [#allocation3], 1 }

</bundles_post_ra>
